<compile_context>
chip_gen: v5e
topology: v5e:2x2
jax: 0.10.0
libtpu: 0.0.40
codegen_flags: <defaults>
</compile_context>

<pallas_src>
import jax
import jax.numpy as jnp
from jax import lax
from jax.experimental import pallas as pl
from jax.experimental.pallas import tpu as pltpu


def _vmem_capacity_bytes():
    try:
        return int(pltpu.get_tpu_info().vmem_capacity_bytes)
    except Exception:
        return 64 * 1024 * 1024  # conservative (v7x-sized) fallback


_VMEM_CAP = _vmem_capacity_bytes()


def _pick_tq(N, C, CP, vmem_cap):
    """Largest query tile (128-multiple dividing N) that fits the VMEM budget."""
    budget = int(vmem_cap * 0.70)
    lane = lambda c: max(c, 128)            # VMEM lane-pads last dims < 128
    # Per-batch residents: double-buffered f32 x block, bf16 K/V scratch,
    # double-buffered weight/bias blocks.
    base = (2 * N * lane(C) * 4
            + N * CP * 2 + N * lane(C) * 2
            + 2 * (C * lane(C) + 2 * C * CP) * 2)
    cand = [t for t in (1024, 512, 256, 128) if t <= N and N % t == 0]
    if vmem_cap <= 64 * 1024 * 1024 and N >= 2048:
        cand = [t for t in cand if t <= 256]   # v7x (64 MiB): cap TQ for large N

    def fits(t):
        per_tile = (2 * t * N * 4                # energy + exp(energy) in f32
                    + t * CP * 6                 # q tile (f32 acc + bf16 copy)
                    + 4 * t * lane(C) * 4)       # double-buffered out + f32 temps
        return base + per_tile <= budget

    fitting = [t for t in cand if fits(t)]
    if not fitting:
        # Smallest legal tile, or a single full-N tile for odd spatial sizes.
        return cand[-1] if cand else N
    multi = [t for t in fitting if N // t >= 2]
    return multi[0] if multi else fitting[0]


def _make_kernel(N, C, CP, TQ):
    def kernel(x_ref, wvt_ref, bv_ref, wqt_ref, bq_ref, wkt_ref, bk_ref,
               gamma_ref, o_ref, k_scr, v_scr):
        # x_ref:    (N, C)  f32   full token block, resident per batch element
        # wvt_ref:  (C, C)  bf16  value weights (1x1 conv, transposed)
        # wqt_ref:  (C, CP) bf16  query weights, zero-padded C//8 -> CP
        # wkt_ref:  (C, CP) bf16  key weights,   zero-padded C//8 -> CP
        # b*_ref:   (1, C) / (1, CP) f32 biases (zero-padded to match)
        # gamma_ref:(1,)    f32   SMEM scalar
        # o_ref:    (TQ, C) f32   output tile
        # k_scr:    (N, CP) bf16, v_scr: (N, C) bf16  (persistent per batch)
        qi = pl.program_id(1)

        # ---- once per batch element: K/V projections into persistent scratch ----
        @pl.when(qi == 0)
        def _():
            xf = x_ref[...].astype(jnp.bfloat16)                       # (N, C)
            v_scr[...] = (jnp.dot(xf, wvt_ref[...],
                                  preferred_element_type=jnp.float32)
                          + bv_ref[...]).astype(jnp.bfloat16)          # (N, C)
            k_scr[...] = (jnp.dot(xf, wkt_ref[...],
                                  preferred_element_type=jnp.float32)
                          + bk_ref[...]).astype(jnp.bfloat16)          # (N, CP)

        # ---- per query tile ----
        row0 = pl.multiple_of(qi * TQ, TQ)
        x_tile = x_ref[pl.ds(row0, TQ), :]                             # (TQ, C) f32
        q = (jnp.dot(x_tile.astype(jnp.bfloat16), wqt_ref[...],
                     preferred_element_type=jnp.float32)
             + bq_ref[...]).astype(jnp.bfloat16)                       # (TQ, CP)

        # energy[i, j] = <q_i, k_j>  (== torch.bmm(Q^T, K)).  NT dot_general is
        # MXU-native (same form as the reference flash-attention kernel), so no
        # transpose of K is materialized.
        energy = lax.dot_general(q, k_scr[...], (((1,), (1,)), ((), ())),
                                 preferred_element_type=jnp.float32)   # (TQ, N)

        # Numerically stable softmax over keys; normalization deferred to the
        # narrow (TQ, C) result.
        m = jnp.max(energy, axis=-1, keepdims=True)
        p = jnp.exp(energy - m)                                        # (TQ, N) f32
        inv = pl.reciprocal(jnp.sum(p, axis=-1, keepdims=True), approx=True)

        # out[n, :] = sum_m p[n, m] * v[m, :]   (== torch.bmm(V, attn^T))
        out = jnp.dot(p.astype(jnp.bfloat16), v_scr[...],
                      preferred_element_type=jnp.float32)              # (TQ, C)

        o_ref[...] = gamma_ref[0] * (out * inv) + x_tile

    return kernel


@jax.jit
def attn_block(x_nchw, wq, bq, wk, bk, wv, bv, gamma):
    """x_nchw: (B, C, H, W) f32.  wq/wk: (C//8, C), wv: (C, C), gamma: (1,)."""
    B, C, H, W = x_nchw.shape
    C8 = wq.shape[0]
    CP = ((C8 + 127) // 128) * 128          # lane-aligned q/k projection width
    N = H * W
    TQ = _pick_tq(N, C, CP, _VMEM_CAP)
    NQ = N // TQ
    vmem_limit = min(int(_VMEM_CAP * 0.75), 100 * 1024 * 1024)

    # NCHW -> (B, N, C) channel-last tokens (transpose + cast fuse in XLA).
    x_nc = jnp.transpose(x_nchw.reshape(B, C, N), (0, 2, 1)).astype(jnp.float32)

    # 1x1-conv weights as (Cin, Cout) matmul operands (bf16 for the MXU); the
    # C//8 query/key widths are zero-padded to CP so scratch and the energy
    # contraction dim are 128-lane aligned (zero columns add nothing).
    def pad_qk(w):                           # (C8, C) -> (C, CP)
        wt = jnp.asarray(w, jnp.float32).T
        return jnp.pad(wt, ((0, 0), (0, CP - C8))).astype(jnp.bfloat16)

    wvt = jnp.asarray(wv, jnp.float32).T.astype(jnp.bfloat16)          # (C, C)
    wqt = pad_qk(wq)
    wkt = pad_qk(wk)
    bv2 = jnp.asarray(bv, jnp.float32).reshape(1, C)
    bq2 = jnp.pad(jnp.asarray(bq, jnp.float32), (0, CP - C8)).reshape(1, CP)
    bk2 = jnp.pad(jnp.asarray(bk, jnp.float32), (0, CP - C8)).reshape(1, CP)
    gamma1 = jnp.asarray(gamma, jnp.float32).reshape(1)

    kernel = _make_kernel(N, C, CP, TQ)

    grid_spec = pltpu.PrefetchScalarGridSpec(
        num_scalar_prefetch=0,
        grid=(B, NQ),
        in_specs=[
            # Full token block; block index depends only on b, so it is DMA'd
            # once per batch element and revisited across the query-tile axis.
            pl.BlockSpec((None, N, C), lambda b, qi: (b, 0, 0)),
            pl.BlockSpec((C, C), lambda b, qi: (0, 0)),         # Wv^T
            pl.BlockSpec((1, C), lambda b, qi: (0, 0)),         # bv
            pl.BlockSpec((C, CP), lambda b, qi: (0, 0)),        # Wq^T (padded)
            pl.BlockSpec((1, CP), lambda b, qi: (0, 0)),        # bq  (padded)
            pl.BlockSpec((C, CP), lambda b, qi: (0, 0)),        # Wk^T (padded)
            pl.BlockSpec((1, CP), lambda b, qi: (0, 0)),        # bk  (padded)
            pl.BlockSpec(memory_space=pltpu.MemorySpace.SMEM),  # gamma scalar
        ],
        out_specs=pl.BlockSpec((None, TQ, C), lambda b, qi: (b, qi, 0)),
        scratch_shapes=[
            pltpu.VMEM((N, CP), jnp.bfloat16),   # K (all tokens, lane-dense)
            pltpu.VMEM((N, C), jnp.bfloat16),    # V (all tokens)
        ],
    )

    out_nc = pl.pallas_call(
        kernel,
        out_shape=jax.ShapeDtypeStruct((B, N, C), jnp.float32),
        grid_spec=grid_spec,
        compiler_params=pltpu.CompilerParams(
            dimension_semantics=("parallel", "arbitrary"),
            vmem_limit_bytes=vmem_limit),
    )(x_nc, wvt, bv2, wqt, bq2, wkt, bk2, gamma1)

    # (B, N, C) -> NCHW.  For C >= 128 the (TQ, C) output stores are lane-dense;
    # for small C they are masked partial stores (negligible at such sizes).
    return jnp.transpose(out_nc, (0, 2, 1)).reshape(B, C, H, W)


def attn_block_reference(x, wq, bq, wk, bk, wv, bv, gamma):
    """Pure-JAX f32 reference mirroring the PyTorch forward exactly (NCHW)."""
    B, C, H, W = x.shape
    N = H * W

    def conv1x1(x, w, b):  # w: (Cout, Cin)
        return jnp.einsum('oc,bchw->bohw', w, x) + b[None, :, None, None]

    q = conv1x1(x, wq, bq).reshape(B, -1, N)            # (B, C8, N)
    k = conv1x1(x, wk, bk).reshape(B, -1, N)            # (B, C8, N)
    v = conv1x1(x, wv, bv).reshape(B, -1, N)            # (B, C, N)
    energy = jnp.einsum('bcn,bcm->bnm', q, k)           # (B, N, N)
    attn = jax.nn.softmax(energy, axis=-1)
    out = jnp.einsum('bcm,bnm->bcn', v, attn).reshape(B, C, H, W)
    return gamma.reshape(()) * out + x


if __name__ == "__main__":
    key = jax.random.PRNGKey(0)
    # in_channels must be >= 8 (C // 8 projection).  N = 16*16 = 256 -> 2 query tiles.
    B, C, H, W = 2, 32, 16, 16
    C8 = C // 8

    k_x, k_wq, k_bq, k_wk, k_bk, k_wv, k_bv = jax.random.split(key, 7)
    x = jax.random.normal(k_x, (B, C, H, W), dtype=jnp.float32)

    # Conv2d 1x1 weights == (Cout, Cin) matrices.
    wq = 0.1 * jax.random.normal(k_wq, (C8, C), dtype=jnp.float32)
    bq = 0.1 * jax.random.normal(k_bq, (C8,), dtype=jnp.float32)
    wk = 0.1 * jax.random.normal(k_wk, (C8, C), dtype=jnp.float32)
    bk = 0.1 * jax.random.normal(k_bk, (C8,), dtype=jnp.float32)
    wv = 0.1 * jax.random.normal(k_wv, (C, C), dtype=jnp.float32)
    bv = 0.1 * jax.random.normal(k_bv, (C,), dtype=jnp.float32)
    # PyTorch inits gamma = 0; use a nonzero value so the attention path is exercised.
    gamma = jnp.asarray([0.5], dtype=jnp.float32)

    out = attn_block(x, wq, bq, wk, bk, wv, bv, gamma)
    out = jax.block_until_ready(out)

    ref = attn_block_reference(x, wq, bq, wk, bk, wv, bv, gamma)
    assert out.shape == (B, C, H, W)
    # bf16 MXU operands (f32 accumulation) + approx reciprocal -> slightly
    # looser tolerance than pure f32.
    assert jnp.allclose(out, ref, atol=2e-2, rtol=2e-2), "Pallas output mismatch vs reference"

    print("KERNEL_OK")
</pallas_src>

<mosaic_0001>
module attributes {stable_mosaic.version = 11 : i64} {
  func.func @kernel(%arg0: i32, %arg1: i32, %arg2: memref<1x256x32xf32, #tpu.memory_space<vmem>>, %arg3: memref<32x32xbf16, #tpu.memory_space<vmem>>, %arg4: memref<1x32xf32, #tpu.memory_space<vmem>>, %arg5: memref<32x128xbf16, #tpu.memory_space<vmem>>, %arg6: memref<1x128xf32, #tpu.memory_space<vmem>>, %arg7: memref<32x128xbf16, #tpu.memory_space<vmem>>, %arg8: memref<1x128xf32, #tpu.memory_space<vmem>>, %arg9: memref<1xf32, #tpu.memory_space<smem>>, %arg10: memref<1x128x32xf32, #tpu.memory_space<vmem>>, %arg11: memref<256x128xbf16, #tpu.memory_space<vmem>>, %arg12: memref<256x32xbf16, #tpu.memory_space<vmem>>) attributes {dimension_semantics = [#tpu.dimension_semantics<parallel>, #tpu.dimension_semantics<arbitrary>], iteration_bounds = array<i64: 2, 2>, scalar_prefetch = 0 : i64, scratch_operands = 2 : i64, tpu.core_type = #tpu.core_type<tc>, window_params = [{transform_indices = @transform_0, window_bounds = array<i64: 1, 256, 32>}, {pipeline_mode = #tpu.pipeline_mode<synchronous>, transform_indices = @transform_1, window_bounds = array<i64: 32, 32>}, {pipeline_mode = #tpu.pipeline_mode<synchronous>, transform_indices = @transform_2, window_bounds = array<i64: 1, 32>}, {pipeline_mode = #tpu.pipeline_mode<synchronous>, transform_indices = @transform_3, window_bounds = array<i64: 32, 128>}, {pipeline_mode = #tpu.pipeline_mode<synchronous>, transform_indices = @transform_4, window_bounds = array<i64: 1, 128>}, {pipeline_mode = #tpu.pipeline_mode<synchronous>, transform_indices = @transform_5, window_bounds = array<i64: 32, 128>}, {pipeline_mode = #tpu.pipeline_mode<synchronous>, transform_indices = @transform_6, window_bounds = array<i64: 1, 128>}, {transform_indices = @transform_7, window_bounds = array<i64: 1>}, {transform_indices = @transform_8, window_bounds = array<i64: 1, 128, 32>}]} {
    %c0_i32 = arith.constant 0 : i32
    %0 = arith.cmpi eq, %arg1, %c0_i32 : i32
    %1 = arith.extui %0 : i1 to i32
    %c0_i32_0 = arith.constant 0 : i32
    %2 = arith.cmpi ne, %1, %c0_i32_0 : i32
    scf.if %2 {
      %c0_18 = arith.constant 0 : index
      %c0_19 = arith.constant 0 : index
      %c0_20 = arith.constant 0 : index
      %37 = vector.load %arg2[%c0_18, %c0_19, %c0_20] : memref<1x256x32xf32, #tpu.memory_space<vmem>>, vector<1x256x32xf32>
      %38 = vector.shape_cast %37 : vector<1x256x32xf32> to vector<256x32xf32>
      %39 = arith.truncf %38 : vector<256x32xf32> to vector<256x32xbf16>
      %c0_21 = arith.constant 0 : index
      %c0_22 = arith.constant 0 : index
      %40 = vector.load %arg3[%c0_21, %c0_22] : memref<32x32xbf16, #tpu.memory_space<vmem>>, vector<32x32xbf16>
      %cst_23 = arith.constant dense<0.000000e+00> : vector<256x32xf32>
      %41 = tpu.matmul %39, %40, %cst_23 {dimension_numbers = #tpu.dot_dimension_numbers<[1], [0], [0], [1], [0, 0, 1, 1], [], []>} : vector<256x32xbf16>, vector<32x32xbf16>, vector<256x32xf32> -> vector<256x32xf32>
      %c0_24 = arith.constant 0 : index
      %c0_25 = arith.constant 0 : index
      %42 = vector.load %arg4[%c0_24, %c0_25] : memref<1x32xf32, #tpu.memory_space<vmem>>, vector<1x32xf32>
      %43 = vector.broadcast %42 : vector<1x32xf32> to vector<256x32xf32>
      %44 = arith.addf %41, %43 : vector<256x32xf32>
      %45 = arith.truncf %44 : vector<256x32xf32> to vector<256x32xbf16>
      %c0_26 = arith.constant 0 : index
      %c0_27 = arith.constant 0 : index
      %46 = vector.load %arg12[%c0_26, %c0_27] : memref<256x32xbf16, #tpu.memory_space<vmem>>, vector<256x32xbf16>
      tpu.vector_store %arg12[%c0_26, %c0_27], %45 {strides = array<i32>} : memref<256x32xbf16, #tpu.memory_space<vmem>>, vector<256x32xbf16>,
      %c0_28 = arith.constant 0 : index
      %c0_29 = arith.constant 0 : index
      %47 = vector.load %arg7[%c0_28, %c0_29] : memref<32x128xbf16, #tpu.memory_space<vmem>>, vector<32x128xbf16>
      %cst_30 = arith.constant dense<0.000000e+00> : vector<256x128xf32>
      %48 = tpu.matmul %39, %47, %cst_30 {dimension_numbers = #tpu.dot_dimension_numbers<[1], [0], [0], [1], [0, 0, 1, 1], [], []>} : vector<256x32xbf16>, vector<32x128xbf16>, vector<256x128xf32> -> vector<256x128xf32>
      %c0_31 = arith.constant 0 : index
      %c0_32 = arith.constant 0 : index
      %49 = vector.load %arg8[%c0_31, %c0_32] : memref<1x128xf32, #tpu.memory_space<vmem>>, vector<1x128xf32>
      %50 = vector.broadcast %49 : vector<1x128xf32> to vector<256x128xf32>
      %51 = arith.addf %48, %50 : vector<256x128xf32>
      %52 = arith.truncf %51 : vector<256x128xf32> to vector<256x128xbf16>
      %c0_33 = arith.constant 0 : index
      %c0_34 = arith.constant 0 : index
      %53 = vector.load %arg11[%c0_33, %c0_34] : memref<256x128xbf16, #tpu.memory_space<vmem>>, vector<256x128xbf16>
      tpu.vector_store %arg11[%c0_33, %c0_34], %52 {strides = array<i32>} : memref<256x128xbf16, #tpu.memory_space<vmem>>, vector<256x128xbf16>,
    } else {
    }
    %c128_i32 = arith.constant 128 : i32
    %3 = arith.muli %arg1, %c128_i32 : i32
    %4 = tpu.assume_multiple %3, 128 : i32
    %c0 = arith.constant 0 : index
    %5 = arith.index_cast %4 : i32 to index
    %c0_1 = arith.constant 0 : index
    %6 = vector.load %arg2[%c0, %5, %c0_1] : memref<1x256x32xf32, #tpu.memory_space<vmem>>, vector<1x128x32xf32>
    %7 = vector.shape_cast %6 : vector<1x128x32xf32> to vector<128x32xf32>
    %8 = arith.truncf %7 : vector<128x32xf32> to vector<128x32xbf16>
    %c0_2 = arith.constant 0 : index
    %c0_3 = arith.constant 0 : index
    %9 = vector.load %arg5[%c0_2, %c0_3] : memref<32x128xbf16, #tpu.memory_space<vmem>>, vector<32x128xbf16>
    %cst = arith.constant dense<0.000000e+00> : vector<128x128xf32>
    %10 = tpu.matmul %8, %9, %cst {dimension_numbers = #tpu.dot_dimension_numbers<[1], [0], [0], [1], [0, 0, 1, 1], [], []>} : vector<128x32xbf16>, vector<32x128xbf16>, vector<128x128xf32> -> vector<128x128xf32>
    %c0_4 = arith.constant 0 : index
    %c0_5 = arith.constant 0 : index
    %11 = vector.load %arg6[%c0_4, %c0_5] : memref<1x128xf32, #tpu.memory_space<vmem>>, vector<1x128xf32>
    %12 = vector.broadcast %11 : vector<1x128xf32> to vector<128x128xf32>
    %13 = arith.addf %10, %12 : vector<128x128xf32>
    %14 = arith.truncf %13 : vector<128x128xf32> to vector<128x128xbf16>
    %c0_6 = arith.constant 0 : index
    %c0_7 = arith.constant 0 : index
    %15 = vector.load %arg11[%c0_6, %c0_7] : memref<256x128xbf16, #tpu.memory_space<vmem>>, vector<256x128xbf16>
    %cst_8 = arith.constant dense<0.000000e+00> : vector<128x256xf32>
    %16 = tpu.matmul %14, %15, %cst_8 {dimension_numbers = #tpu.dot_dimension_numbers<[1], [1], [0], [0], [0, 0, 1, 0], [], []>} : vector<128x128xbf16>, vector<256x128xbf16>, vector<128x256xf32> -> vector<128x256xf32>
    %cst_9 = arith.constant dense<0xFF800000> : vector<128xf32>
    %17 = vector.multi_reduction <maximumf>, %16, %cst_9 [1] : vector<128x256xf32> to vector<128xf32>
    %18 = vector.shape_cast %17 : vector<128xf32> to vector<128x1xf32>
    %19 = vector.broadcast %18 : vector<128x1xf32> to vector<128x256xf32>
    %20 = arith.subf %16, %19 : vector<128x256xf32>
    %21 = math.exp %20 : vector<128x256xf32>
    %cst_10 = arith.constant dense<0.000000e+00> : vector<128xf32>
    %22 = vector.multi_reduction <add>, %21, %cst_10 [1] : vector<128x256xf32> to vector<128xf32>
    %23 = vector.shape_cast %22 : vector<128xf32> to vector<128x1xf32>
    %24 = tpu.reciprocal %23 {approx = true} : vector<128x1xf32> -> vector<128x1xf32>
    %25 = arith.truncf %21 : vector<128x256xf32> to vector<128x256xbf16>
    %c0_11 = arith.constant 0 : index
    %c0_12 = arith.constant 0 : index
    %26 = vector.load %arg12[%c0_11, %c0_12] : memref<256x32xbf16, #tpu.memory_space<vmem>>, vector<256x32xbf16>
    %cst_13 = arith.constant dense<0.000000e+00> : vector<128x32xf32>
    %27 = tpu.matmul %25, %26, %cst_13 {dimension_numbers = #tpu.dot_dimension_numbers<[1], [0], [0], [1], [0, 0, 1, 1], [], []>} : vector<128x256xbf16>, vector<256x32xbf16>, vector<128x32xf32> -> vector<128x32xf32>
    %c0_14 = arith.constant 0 : index
    %28 = memref.load %arg9[%c0_14] : memref<1xf32, #tpu.memory_space<smem>>
    %29 = vector.broadcast %24 : vector<128x1xf32> to vector<128x32xf32>
    %30 = arith.mulf %27, %29 : vector<128x32xf32>
    %31 = vector.broadcast %28 : f32 to vector<128x32xf32>
    %32 = arith.mulf %31, %30 : vector<128x32xf32>
    %33 = arith.addf %32, %7 : vector<128x32xf32>
    %c0_15 = arith.constant 0 : index
    %c0_16 = arith.constant 0 : index
    %c0_17 = arith.constant 0 : index
    %34 = vector.load %arg10[%c0_15, %c0_16, %c0_17] : memref<1x128x32xf32, #tpu.memory_space<vmem>>, vector<1x128x32xf32>
    %35 = vector.shape_cast %34 : vector<1x128x32xf32> to vector<128x32xf32>
    %36 = vector.shape_cast %33 : vector<128x32xf32> to vector<1x128x32xf32>
    tpu.vector_store %arg10[%c0_15, %c0_16, %c0_17], %36 {strides = array<i32>} : memref<1x128x32xf32, #tpu.memory_space<vmem>>, vector<1x128x32xf32>,
    return
  }
  func.func @transform_0(%arg0: i32, %arg1: i32) -> (i32, i32, i32) {
    %c0_i32 = arith.constant 0 : i32
    %c0_i32_0 = arith.constant 0 : i32
    %c0_i32_1 = arith.constant 0 : i32
    return %arg0, %c0_i32, %c0_i32_0 : i32, i32, i32
  }
  func.func @transform_1(%arg0: i32, %arg1: i32) -> (i32, i32) {
    %c0_i32 = arith.constant 0 : i32
    %c0_i32_0 = arith.constant 0 : i32
    %c0_i32_1 = arith.constant 0 : i32
    return %c0_i32, %c0_i32_0 : i32, i32
  }
  func.func @transform_2(%arg0: i32, %arg1: i32) -> (i32, i32) {
    %c0_i32 = arith.constant 0 : i32
    %c0_i32_0 = arith.constant 0 : i32
    %c0_i32_1 = arith.constant 0 : i32
    return %c0_i32, %c0_i32_0 : i32, i32
  }
  func.func @transform_3(%arg0: i32, %arg1: i32) -> (i32, i32) {
    %c0_i32 = arith.constant 0 : i32
    %c0_i32_0 = arith.constant 0 : i32
    %c0_i32_1 = arith.constant 0 : i32
    return %c0_i32, %c0_i32_0 : i32, i32
  }
  func.func @transform_4(%arg0: i32, %arg1: i32) -> (i32, i32) {
    %c0_i32 = arith.constant 0 : i32
    %c0_i32_0 = arith.constant 0 : i32
    %c0_i32_1 = arith.constant 0 : i32
    return %c0_i32, %c0_i32_0 : i32, i32
  }
  func.func @transform_5(%arg0: i32, %arg1: i32) -> (i32, i32) {
    %c0_i32 = arith.constant 0 : i32
    %c0_i32_0 = arith.constant 0 : i32
    %c0_i32_1 = arith.constant 0 : i32
    return %c0_i32, %c0_i32_0 : i32, i32
  }
  func.func @transform_6(%arg0: i32, %arg1: i32) -> (i32, i32) {
    %c0_i32 = arith.constant 0 : i32
    %c0_i32_0 = arith.constant 0 : i32
    %c0_i32_1 = arith.constant 0 : i32
    return %c0_i32, %c0_i32_0 : i32, i32
  }
  func.func @transform_7(%arg0: i32, %arg1: i32) -> i32 {
    %c0_i32 = arith.constant 0 : i32
    %c0_i32_0 = arith.constant 0 : i32
    return %c0_i32 : i32
  }
  func.func @transform_8(%arg0: i32, %arg1: i32) -> (i32, i32, i32) {
    %c0_i32 = arith.constant 0 : i32
    %c0_i32_0 = arith.constant 0 : i32
    return %arg0, %arg1, %c0_i32 : i32, i32, i32
  }
}

</mosaic_0001>

<bundles_post_ra>
// kernel: attn_block.1
= control target key start
LH: loop header
LB: loop body
LE: loop exit
PB: predicated region body
PF: predicated region fallthrough
CT: control target
= control target key end

     0   :  { %s3152_s0 = inlined_call_operand.hbm [shape: f32[2,256,32], index: 0, kind: input, shape index: {}]   ;;  %s3153_s1 = inlined_call_operand.vmem [shape: bf16[32,32], index: 1, kind: input, shape index: {}]   ;;  %s3154_s2 = inlined_call_operand.vmem [shape: f32[1,32], index: 2, kind: input, shape index: {}]   ;;  %s3155_s3 = inlined_call_operand.vmem [shape: bf16[32,128], index: 3, kind: input, shape index: {}]   ;;  %s3156_s4 = inlined_call_operand.vmem [shape: f32[1,128], index: 4, kind: input, shape index: {}]   ;;  %s3157_s5 = inlined_call_operand.vmem [shape: bf16[32,128], index: 5, kind: input, shape index: {}]   ;;  %s3158_s6 = inlined_call_operand.vmem [shape: f32[1,128], index: 6, kind: input, shape index: {}]   ;;  %s3159_s7 = inlined_call_operand.<no memory space> [shape: f32[1], index: 7, kind: input, shape index: {}]   ;;  %s3160_s8 = inlined_call_operand.hbm [shape: f32[2,256,32], index: 8, kind: output, shape index: {}]  }
   0x1   :  { %3168 = sst [smem:[#allocation18_spill]] %s3160_s8 }
   0x2   :  { %13 = sst [smem:[#allocation4]] %s3159_s7 }
   0x3   :  { %14 = vsyncpa [#allocation6], 0 }
   0x4   :  { %16 = vsyncpa [#allocation6 + $0x1], 0 }
   0x5   :  { %17 = vsyncpa [#allocation7], 0 }
   0x6   :  { %19 = vsyncpa [#allocation7 + $0x1], 0  ;;  %s2536_s29 = smov 0   ;;  %s2538_s30 = smov 0  }
   0x7   :  { %s2540_s9 = smov 0   ;;  %s2542_s10 = smov 0  }
   0x8   :  { %s2544_s11 = smov 0   ;;  %s2546_s12 = smov 0  }
   0x9   :  { %s2548_s13 = smov 0   ;;  %s2550_s14 = smov 0  }
   0xa   :  { %s2552_s7 = smov 0   ;;  %s2554_s15 = smov 0  }
   0xb   :  { %s2556_s16 = smov 0  }
   0xc LB: > { %3169 = sst [smem:[#allocation11_spill]] %s2474_s7  ;;  %s1768_s17 = sadd.s32 4294967295, %s2482_s16   ;;  %s2482_s16 = sphi %s2556_s16, %s25_s16   ;;  %s2478_s15 = sphi %s2554_s15, %s3194_s15   ;;  %s2474_s7 = sphi %s2552_s7, %s3186_s7   ;;  %s2470_s14 = sphi %s2550_s14, %s3185_s14   ;;  %s2466_s13 = sphi %s2548_s13, %s3184_s13   ;;  %s2462_s12 = sphi %s2546_s12, %s3193_s12   ;;  %s2458_s11 = sphi %s2544_s11, %s3192_s11   ;;  %s2454_s10 = sphi %s2542_s10, %s3191_s10   ;;  %s2450_s9 = sphi %s2540_s9, %s3190_s9   ;;  %s2446_s30 = sphi %s2538_s30, %s3189_s30   ;;  %s2442_s29 = sphi %s2536_s29, %s3188_s29  }
   0xd   : > { %3170 = sst [smem:[#allocation12_spill]] %s2478_s15  ;;  %s1769_s18 = sadd.s32 4294967294, %s2482_s16  }
   0xe   : > { %s34_s19 = sadd.s32 1, %s2474_s7  ;;  %s37_s20 = sadd.s32 1, %s2478_s15 }
   0xf   : > { %p35_p0 = scmp.ge.s32.totalorder %s34_s19, 2  ;;  %s44_s21 = sadd.s32 1, %s2462_s12 }
  0x10   : > { %p51_p1 = scmp.ne.s32.totalorder %s2462_s12, %s2458_s11  ;;  %p52_p2 = scmp.eq.s32.totalorder %s2482_s16, 0 }
  0x11   : > { %s3196_s19 = smov (%p35_p0, %s34_s19), 0  ;;  %s3198_s20 = smov (!%p35_p0, %s37_s20), %s2478_s15 }
  0x12   : > { %3171 = sst [smem:[#allocation13_spill]] %s3196_s19  ;;  %p2600_p3 = por %p52_p2, %p51_p1 }
  0x13   : > { %p57_p4 = scmp.ne.s32.totalorder %s2458_s11, %s2454_s10  ;;  %p39_p5 = scmp.ge.s32.totalorder %s3198_s20, 2 }
  0x14   : > { %p58_p6 = scmp.eq.s32.totalorder %s1768_s17, 0  ;;  %s215_s23 = ssub.s32 %s2474_s7, %s3196_s19 }
  0x15   : > { %s219_s24 = sadd.s32 1, %s2450_s9  ;;  %s3200_s20 = smov (%p39_p5, %s3198_s20), 0 }
  0x16   : > { %3173 = sst [smem:[#allocation14_spill]] %s3200_s20  ;;  %p2610_p7 = por %p58_p6, %p57_p4 }
  0x17   : > { %p229_p8 = scmp.ne.s32.totalorder %s2450_s9, %s2446_s30  ;;  %s41_s26 = ssub.s32 %s2478_s15, %s3200_s20 }
  0x18   : > { %p230_p9 = scmp.eq.s32.totalorder %s1768_s17, 3  ;;  %p42_p10 = scmp.eq.s32.totalorder %s41_s26, 0 }
  0x19   : > { %s216_s27 = sor.u32 %s215_s23, %s41_s26  ;;  %p235_p13 = scmp.ne.s32.totalorder %s2446_s30, %s2442_s29 }
  0x1a   : > { %p217_p11 = scmp.eq.s32.totalorder %s216_s27, 0  ;;  %p2618_p12 = por %p230_p9, %p229_p8 }
  0x1b   : > { %s2623_s10 = scalar_select %p42_p10, %s2462_s12, %s44_s21  }
  0x1c   : > { %s3175_s28 = scalar_select %p2618_p12, 1, 0 }
  0x1d   : > { %3177 = sst [smem:[#allocation16_spill]] %s2623_s10  ;;  %p236_p0 = scmp.eq.s32.totalorder %s1769_s18, 3 }
  0x1e   : > { %3176 = sst [smem:[#allocation15_spill]] %s3175_s28  ;;  %p2130_p1 = scmp.lt.s32.totalorder %s2482_s16, 4 }
  0x1f   : > { %s2626_s19 = scalar_select %p217_p11, %s2450_s9, %s219_s24  }
  0x20   : > { %p2631_p2 = por %p236_p0, %p235_p13  ;;  %s277_s17 = sand.u32 1, %s2462_s12  }
  0x21   : > { %3178 = sst [smem:[#allocation17_spill]] %s2626_s19  ;;  %s1772_s23 = sshll.u32 %s277_s17, 8 }
  0x22   : > { %s1978_s26 = sshll.u32 %s2478_s15, 8  ;;  %s281_s21 = scalar_lea.vmem [#allocation5], %s1772_s23 }
  0x23   : > { %s286_s28 = scalar_lea.hbm %s3152_s0, %s1978_s26  ;;  %s289_s10 = sshll.u32 %s281_s21, 4  ;;  %s290_s10 = int_to_ptr.vmem [resolvable:$true] %s289_s10 }
  0x24   : > { %s287_s8 = sshll.u32 %s286_s28, 4  ;;  %p2123_p4 = pnand %p2130_p1, %p2600_p3  ;;  %s288_s8 = int_to_ptr.hbm [resolvable:$true] %s287_s8 }
  0x25   : > { %p1775_p5 = scmp.ge.s32.totalorder %s2482_s16, 1  ;;  %s278_s18 = scalar_lea.sflag [#allocation6], %s277_s17 }
  0x26   : > { %s2484_s24 = smov 128   ;;  %s2485_s19 = smov 8  }
  0x27   : > { %2125 = dma.hbm_to_vmem [thread:$0]  (!%p2123_p4), %s288_s8, 4096, %s290_s10, %s278_s18, %s2484_s24, %s2484_s24, %s2485_s19  }
  0x28   : > { %p297_p6 = scmp.lt.s32.totalorder %s2482_s16, 5 }
  0x2a   : > { %p298_p8 = pnand %p1775_p5, %p297_p6 }
  0x2b   : > { %s303_s15 = sand.u32 (!%p298_p8), 1, %s2458_s11  }
  0x2c   : > { %301 = sbr.rel (%p298_p8) target bundleno = 1004 (0x3ec), region = 52  ;;  %s1776_s20 = sshll.u32 (!%p298_p8), %s303_s15, 8 }
  0x2d   : > { %s304_s26 = scalar_lea.sflag (!%p298_p8), [#allocation6], %s303_s15  ;;  %s2645_s23 = scalar_lea.vmem (!%p298_p8), [#allocation5], %s1776_s20 }
  0x31   : > { %2433 = dma.done.wait (%p2610_p7), %s304_s26, 4096  }
  0x32   : > { %2435 = vsyncadd (%p2610_p7), %s304_s26, 4294963200  ;;  %s338_s22 = sand.u32 1, %s2446_s30   ;;  %p1778_p3 = scmp.ne.s32.totalorder %s2466_s13, 0 }
  0x33   : > { %s1777_s8 = sshll.u32 %s338_s22, 7 }
  0x34   : > { %s2654_s19 = scalar_lea.vmem [#allocation8], %s1777_s8  ;;  %346 = sbr.rel (%p1778_p3) target bundleno = 323 (0x143), region = 60 }
  0x39   : > { %v1980_v0 = vld [vmem:[%s3153_s1 + $0x8] sm:$0xff]  ;;  %v1979_v2 = vld [vmem:[%s3153_s1] sm:$0xff]  ;;  %vm415_vm0 = vcmask 261120   ;;  %v349_v10 = vld [vmem:[%s2645_s23 + $0x10] sm:$0xff]  ;;  %vm585_vm1 = vcmask 257024  }
  0x3a   : > { %v1982_v1 = vld [vmem:[%s3157_s5 + $0x8] sm:$0xff]  ;;  %v347_v3 = vld [vmem:[%s2645_s23] sm:$0xff]  ;;  %470 = vmatpush.bf16.msra.mxu0 %v1980_v0  ;;  %2112 = vmatpush.bf16.msra.mxu2 %v1980_v0  ;;  %v350_v11 = vld [vmem:[%s2645_s23 + $0x18] sm:$0xff] }
  0x3b   : > { %v348_v4 = vld [vmem:[%s2645_s23 + $0x8] sm:$0xff]  ;;  %v363_v5 = vld [vmem:[%s2645_s23 + $0x80] sm:$0xff]  ;;  %644 = vmatpush.bf16.msra.mxu1 %v1982_v1  ;;  %2114 = vmatpush.bf16.msra.mxu3 %v1982_v1  ;;  %v365_v12 = vld [vmem:[%s2645_s23 + $0x90] sm:$0xff]  ;;  %v380_v14 = vpack.c.bf16 %v350_v11, %v349_v10 }
  0x3c   : > { %v364_v6 = vld [vmem:[%s2645_s23 + $0x88] sm:$0xff]  ;;  %v1981_v7 = vld [vmem:[%s3157_s5] sm:$0xff]  ;;  %v379_v8 = vpack.c.bf16 %v348_v4, %v347_v3  ;;  %v366_v13 = vld [vmem:[%s2645_s23 + $0x98] sm:$0xff] }
  0x3d   : > { %v387_v9 = vpack.c.bf16 %v364_v6, %v363_v5  ;;  %v388_v15 = vpack.c.bf16 %v366_v13, %v365_v12  ;;  %v351_v16 = vld [vmem:[%s2645_s23 + $0x20] sm:$0xff]  ;;  %v352_v17 = vld [vmem:[%s2645_s23 + $0x28] sm:$0xff]  ;;  %v353_v22 = vld [vmem:[%s2645_s23 + $0x30] sm:$0xff] }
  0x3e   : > { %471 = vmatpush.bf16.msra.mxu0 %v1979_v2  ;;  %2113 = vmatpush.bf16.msra.mxu2 %v1979_v2  ;;  %v367_v18 = vld [vmem:[%s2645_s23 + $0xa0] sm:$0xff]  ;;  %v368_v19 = vld [vmem:[%s2645_s23 + $0xa8] sm:$0xff]  ;;  %v381_v20 = vpack.c.bf16 %v352_v17, %v351_v16  ;;  %v354_v23 = vld [vmem:[%s2645_s23 + $0x38] sm:$0xff] }
  0x3f   : > { %645 = vmatpush.bf16.msra.mxu1 %v1981_v7  ;;  %2115 = vmatpush.bf16.msra.mxu3 %v1981_v7  ;;  %v389_v21 = vpack.c.bf16 %v368_v19, %v367_v18  ;;  %v369_v24 = vld [vmem:[%s2645_s23 + $0xb0] sm:$0xff]  ;;  %v370_v25 = vld [vmem:[%s2645_s23 + $0xb8] sm:$0xff]  ;;  %v382_v26 = vpack.c.bf16 %v354_v23, %v353_v22  ;;  %v355_v28 = vld [vmem:[%s2645_s23 + $0x40] sm:$0xff] }
  0x40   : > { %v390_v27 = vpack.c.bf16 %v370_v25, %v369_v24  ;;  %v356_v29 = vld [vmem:[%s2645_s23 + $0x48] sm:$0xff]  ;;  %v371_v30 = vld [vmem:[%s2645_s23 + $0xc0] sm:$0xff]  ;;  %v357_v34 = vld [vmem:[%s2645_s23 + $0x50] sm:$0xff] }
  0x41   : > { %1787 = vmatmul.msk.bf16.vlgmr.msra.gmra.mxu0 %vm415_vm0, %v379_v8  ;;  %1795 = vmatmul.msk.bf16.vlgmr.msra.gmra.mxu2 %vm415_vm0, %v387_v9  ;;  %v372_v31 = vld [vmem:[%s2645_s23 + $0xc8] sm:$0xff]  ;;  %v383_v32 = vpack.c.bf16 %v356_v29, %v355_v28  ;;  %v358_v35 = vld [vmem:[%s2645_s23 + $0x58] sm:$0xff]  ;;  %v373_v36 = vld [vmem:[%s2645_s23 + $0xd0] sm:$0xff] }
  0x42   : > { %1811 = vmatmul.msk.bf16.vlgmr.msra.gmra.mxu1 %vm415_vm0, %v379_v8  ;;  %1819 = vmatmul.msk.bf16.vlgmr.msra.gmra.mxu3 %vm415_vm0, %v387_v9  ;;  %v391_v33 = vpack.c.bf16 %v372_v31, %v371_v30  ;;  %v374_v37 = vld [vmem:[%s2645_s23 + $0xd8] sm:$0xff]  ;;  %v384_v38 = vpack.c.bf16 %v358_v35, %v357_v34  ;;  %v359_v40 = vld [vmem:[%s2645_s23 + $0x60] sm:$0xff]  ;;  %v360_v41 = vld [vmem:[%s2645_s23 + $0x68] sm:$0xff] }
  0x43   : > { %v392_v39 = vpack.c.bf16 %v374_v37, %v373_v36  ;;  %v375_v42 = vld [vmem:[%s2645_s23 + $0xe0] sm:$0xff]  ;;  %v376_v43 = vld [vmem:[%s2645_s23 + $0xe8] sm:$0xff]  ;;  %v385_v44 = vpack.c.bf16 %v360_v41, %v359_v40  ;;  %v361_v46 = vld [vmem:[%s2645_s23 + $0x70] sm:$0xff] }
  0x44   : > { %v393_v45 = vpack.c.bf16 %v376_v43, %v375_v42  ;;  %v362_v47 = vld [vmem:[%s2645_s23 + $0x78] sm:$0xff]  ;;  %v377_v48 = vld [vmem:[%s2645_s23 + $0xf0] sm:$0xff]  ;;  %v2736_v52 = vld [vmem:[%s3154_s2] ss:$0 sm:$0xff] }
  0x45   : > { %v378_v49 = vld [vmem:[%s2645_s23 + $0xf8] sm:$0xff]  ;;  %v386_v50 = vpack.c.bf16 %v362_v47, %v361_v46  ;;  %v2743_v57 = vld [vmem:[%s3158_s6] ss:$0 sm:$0xff] }
  0x46   : > { %v394_v51 = vpack.c.bf16 %v378_v49, %v377_v48 }
  0x51   : > { %1788 = vmatmul.msk.bf16.gmra.mxu0 %vm415_vm0, %v380_v14  ;;  %1796 = vmatmul.msk.bf16.gmra.mxu2 %vm415_vm0, %v388_v15 }
  0x52   : > { %1812 = vmatmul.msk.bf16.gmra.mxu1 %vm415_vm0, %v380_v14  ;;  %1820 = vmatmul.msk.bf16.gmra.mxu3 %vm415_vm0, %v388_v15 }
  0x61   : > { %1789 = vmatmul.msk.bf16.gmra.mxu0 %vm415_vm0, %v381_v20  ;;  %1797 = vmatmul.msk.bf16.gmra.mxu2 %vm415_vm0, %v389_v21 }
  0x62   : > { %1813 = vmatmul.msk.bf16.gmra.mxu1 %vm415_vm0, %v381_v20  ;;  %1821 = vmatmul.msk.bf16.gmra.mxu3 %vm415_vm0, %v389_v21 }
  0x71   : > { %1790 = vmatmul.msk.bf16.gmra.mxu0 %vm415_vm0, %v382_v26  ;;  %1798 = vmatmul.msk.bf16.gmra.mxu2 %vm415_vm0, %v390_v27 }
  0x72   : > { %1814 = vmatmul.msk.bf16.gmra.mxu1 %vm415_vm0, %v382_v26  ;;  %1822 = vmatmul.msk.bf16.gmra.mxu3 %vm415_vm0, %v390_v27 }
  0x81   : > { %1791 = vmatmul.msk.bf16.gmra.mxu0 %vm415_vm0, %v383_v32  ;;  %1799 = vmatmul.msk.bf16.gmra.mxu2 %vm415_vm0, %v391_v33 }
  0x82   : > { %1815 = vmatmul.msk.bf16.gmra.mxu1 %vm415_vm0, %v383_v32  ;;  %1823 = vmatmul.msk.bf16.gmra.mxu3 %vm415_vm0, %v391_v33 }
  0x91   : > { %1792 = vmatmul.msk.bf16.gmra.mxu0 %vm415_vm0, %v384_v38  ;;  %1800 = vmatmul.msk.bf16.gmra.mxu2 %vm415_vm0, %v392_v39 }
  0x92   : > { %1816 = vmatmul.msk.bf16.gmra.mxu1 %vm415_vm0, %v384_v38  ;;  %1824 = vmatmul.msk.bf16.gmra.mxu3 %vm415_vm0, %v392_v39 }
  0xa1   : > { %1793 = vmatmul.msk.bf16.gmra.mxu0 %vm415_vm0, %v385_v44  ;;  %1801 = vmatmul.msk.bf16.gmra.mxu2 %vm415_vm0, %v393_v45 }
  0xa2   : > { %1817 = vmatmul.msk.bf16.gmra.mxu1 %vm415_vm0, %v385_v44  ;;  %1825 = vmatmul.msk.bf16.gmra.mxu3 %vm415_vm0, %v393_v45 }
  0xb1   : > { %1794 = vmatmul.msk.bf16.gmra.mxu0 %vm415_vm0, %v386_v50  ;;  %1802 = vmatmul.msk.bf16.gmra.mxu2 %vm415_vm0, %v394_v51 }
  0xb2   : > { %1818 = vmatmul.msk.bf16.gmra.mxu1 %vm415_vm0, %v386_v50  ;;  %1826 = vmatmul.msk.bf16.gmra.mxu3 %vm415_vm0, %v394_v51 }
  0xbe   : > { %v473_v53 = vpop.f32.mrf.mxu0 }
  0xbf   : > { %v474_v54 = vadd.f32 %v2736_v52, %v473_v53  ;;  %v647_v55 = vpop.f32.mrf.mxu1 }
  0xc0   : > { %v648_v1 = vadd.f32 %v2743_v57, %v647_v55 }
  0xc1   : > { %v553_v56 = vpack.c.bf16 %v474_v54, %v474_v54 }
  0xc3   : > { %586 = vst.msk [vmem:[#allocation3] sm:$0xf] %vm585_vm1, %v553_v56 }
  0xc4   : > { %v513_v58 = vpop.f32.mrf.mxu2 }
  0xc5   : > { %v514_v59 = vadd.f32 %v2736_v52, %v513_v58  ;;  %v687_v60 = vpop.f32.mrf.mxu3 }
  0xc6   : > { %v475_v61 = vpop.f32.mrf.mxu0  ;;  %v688_v8 = vadd.f32 %v2743_v57, %v687_v60 }
  0xc7   : > { %v569_v62 = vpack.c.bf16 %v514_v59, %v514_v59  ;;  %v476_v63 = vadd.f32 %v2736_v52, %v475_v61  ;;  %v649_v0 = vpop.f32.mrf.mxu1 }
  0xc8   : > { %v650_v2 = vadd.f32 %v2743_v57, %v649_v0 }
  0xc9   : > { %602 = vst.msk [vmem:[#allocation3 + $0x40] sm:$0xf] %vm585_vm1, %v569_v62  ;;  %v554_v3 = vpack.c.bf16 %v476_v63, %v476_v63 }
  0xca   : > { %v2020_v4 = vpack.c.bf16 %v650_v2, %v648_v1 }
  0xcb   : > { %587 = vst.msk [vmem:[#allocation3 + $0x4] sm:$0xf] %vm585_vm1, %v554_v3 }
  0xcc   : > { %2021 = vst [vmem:[#allocation2 + $0x30] sm:$0xff] %v2020_v4   ;;  %v515_v5 = vpop.f32.mrf.mxu2 }
  0xcd   : > { %v516_v6 = vadd.f32 %v2736_v52, %v515_v5  ;;  %v689_v7 = vpop.f32.mrf.mxu3 }
  0xce   : > { %v690_v9 = vadd.f32 %v2743_v57, %v689_v7  ;;  %v478_v10 = vpop.f32.mrf.mxu0 }
  0xcf   : > { %v570_v11 = vpack.c.bf16 %v516_v6, %v516_v6  ;;  %v479_v12 = vadd.f32 %v2736_v52, %v478_v10  ;;  %v652_v13 = vpop.f32.mrf.mxu1 }
  0xd0   : > { %v2060_v14 = vpack.c.bf16 %v690_v9, %v688_v8  ;;  %v653_v23 = vadd.f32 %v2743_v57, %v652_v13 }
  0xd1   : > { %603 = vst.msk [vmem:[#allocation3 + $0x44] sm:$0xf] %vm585_vm1, %v570_v11  ;;  %v555_v15 = vpack.c.bf16 %v479_v12, %v479_v12 }
  0xd2   : > { %2104 = vst [vmem:[#allocation2 + $0x40] sm:$0xff] %v2060_v14  }
  0xd3   : > { %588 = vst.msk [vmem:[#allocation3 + $0x8] sm:$0xf] %vm585_vm1, %v555_v15 }
  0xd4   : > { %v518_v16 = vpop.f32.mrf.mxu2 }
  0xd5   : > { %v519_v17 = vadd.f32 %v2736_v52, %v518_v16  ;;  %v692_v18 = vpop.f32.mrf.mxu3 }
  0xd6   : > { %v480_v19 = vpop.f32.mrf.mxu0  ;;  %v693_v30 = vadd.f32 %v2743_v57, %v692_v18 }
  0xd7   : > { %v571_v20 = vpack.c.bf16 %v519_v17, %v519_v17  ;;  %v481_v21 = vadd.f32 %v2736_v52, %v480_v19  ;;  %v654_v22 = vpop.f32.mrf.mxu1 }
  0xd8   : > { %v655_v24 = vadd.f32 %v2743_v57, %v654_v22 }
  0xd9   : > { %604 = vst.msk [vmem:[#allocation3 + $0x48] sm:$0xf] %vm585_vm1, %v571_v20  ;;  %v556_v25 = vpack.c.bf16 %v481_v21, %v481_v21 }
  0xda   : > { %v2025_v26 = vpack.c.bf16 %v655_v24, %v653_v23 }
  0xdb   : > { %589 = vst.msk [vmem:[#allocation3 + $0xc] sm:$0xf] %vm585_vm1, %v556_v25 }
  0xdc   : > { %2097 = vst [vmem:[#allocation2] sm:$0xff] %v2025_v26   ;;  %v520_v27 = vpop.f32.mrf.mxu2 }
  0xdd   : > { %v521_v28 = vadd.f32 %v2736_v52, %v520_v27  ;;  %v694_v29 = vpop.f32.mrf.mxu3 }
  0xde   : > { %v695_v31 = vadd.f32 %v2743_v57, %v694_v29  ;;  %v483_v32 = vpop.f32.mrf.mxu0 }
  0xdf   : > { %v572_v33 = vpack.c.bf16 %v521_v28, %v521_v28  ;;  %v484_v34 = vadd.f32 %v2736_v52, %v483_v32  ;;  %v657_v35 = vpop.f32.mrf.mxu1 }
  0xe0   : > { %v2065_v36 = vpack.c.bf16 %v695_v31, %v693_v30  ;;  %v658_v45 = vadd.f32 %v2743_v57, %v657_v35 }
  0xe1   : > { %605 = vst.msk [vmem:[#allocation3 + $0x4c] sm:$0xf] %vm585_vm1, %v572_v33  ;;  %v557_v37 = vpack.c.bf16 %v484_v34, %v484_v34 }
  0xe2   : > { %2105 = vst [vmem:[#allocation2 + $0x20] sm:$0xff] %v2065_v36  }
  0xe3   : > { %590 = vst.msk [vmem:[#allocation3 + $0x10] sm:$0xf] %vm585_vm1, %v557_v37 }
  0xe4   : > { %v523_v38 = vpop.f32.mrf.mxu2 }
  0xe5   : > { %v524_v39 = vadd.f32 %v2736_v52, %v523_v38  ;;  %v697_v40 = vpop.f32.mrf.mxu3 }
  0xe6   : > { %v485_v41 = vpop.f32.mrf.mxu0  ;;  %v698_v53 = vadd.f32 %v2743_v57, %v697_v40 }
  0xe7   : > { %v573_v42 = vpack.c.bf16 %v524_v39, %v524_v39  ;;  %v486_v43 = vadd.f32 %v2736_v52, %v485_v41  ;;  %v659_v44 = vpop.f32.mrf.mxu1 }
  0xe8   : > { %v660_v46 = vadd.f32 %v2743_v57, %v659_v44 }
  0xe9   : > { %606 = vst.msk [vmem:[#allocation3 + $0x50] sm:$0xf] %vm585_vm1, %v573_v42  ;;  %v558_v47 = vpack.c.bf16 %v486_v43, %v486_v43 }
  0xea   : > { %v2030_v48 = vpack.c.bf16 %v660_v46, %v658_v45 }
  0xeb   : > { %591 = vst.msk [vmem:[#allocation3 + $0x14] sm:$0xf] %vm585_vm1, %v558_v47 }
  0xec   : > { %2098 = vst [vmem:[#allocation2 + $0x58] sm:$0xff] %v2030_v48   ;;  %v525_v49 = vpop.f32.mrf.mxu2 }
  0xed   : > { %v526_v50 = vadd.f32 %v2736_v52, %v525_v49  ;;  %v699_v51 = vpop.f32.mrf.mxu3 }
  0xee   : > { %v700_v54 = vadd.f32 %v2743_v57, %v699_v51  ;;  %v488_v55 = vpop.f32.mrf.mxu0 }
  0xef   : > { %v574_v56 = vpack.c.bf16 %v526_v50, %v526_v50  ;;  %v489_v58 = vadd.f32 %v2736_v52, %v488_v55  ;;  %v662_v59 = vpop.f32.mrf.mxu1 }
  0xf0   : > { %v2070_v60 = vpack.c.bf16 %v700_v54, %v698_v53  ;;  %v663_v5 = vadd.f32 %v2743_v57, %v662_v59 }
  0xf1   : > { %607 = vst.msk [vmem:[#allocation3 + $0x54] sm:$0xf] %vm585_vm1, %v574_v56  ;;  %v559_v61 = vpack.c.bf16 %v489_v58, %v489_v58 }
  0xf2   : > { %2106 = vst [vmem:[#allocation2 + $0x10] sm:$0xff] %v2070_v60  }
  0xf3   : > { %592 = vst.msk [vmem:[#allocation3 + $0x18] sm:$0xf] %vm585_vm1, %v559_v61 }
  0xf4   : > { %v528_v62 = vpop.f32.mrf.mxu2 }
  0xf5   : > { %v529_v63 = vadd.f32 %v2736_v52, %v528_v62  ;;  %v702_v0 = vpop.f32.mrf.mxu3 }
  0xf6   : > { %v490_v1 = vpop.f32.mrf.mxu0  ;;  %v703_v12 = vadd.f32 %v2743_v57, %v702_v0 }
  0xf7   : > { %v575_v2 = vpack.c.bf16 %v529_v63, %v529_v63  ;;  %v491_v3 = vadd.f32 %v2736_v52, %v490_v1  ;;  %v664_v4 = vpop.f32.mrf.mxu1 }
  0xf8   : > { %v665_v6 = vadd.f32 %v2743_v57, %v664_v4 }
  0xf9   : > { %608 = vst.msk [vmem:[#allocation3 + $0x58] sm:$0xf] %vm585_vm1, %v575_v2  ;;  %v560_v7 = vpack.c.bf16 %v491_v3, %v491_v3 }
  0xfa   : > { %v2035_v8 = vpack.c.bf16 %v665_v6, %v663_v5 }
  0xfb   : > { %593 = vst.msk [vmem:[#allocation3 + $0x1c] sm:$0xf] %vm585_vm1, %v560_v7 }
  0xfc   : > { %2099 = vst [vmem:[#allocation2 + $0x18] sm:$0xff] %v2035_v8   ;;  %v530_v9 = vpop.f32.mrf.mxu2 }
  0xfd   : > { %v531_v10 = vadd.f32 %v2736_v52, %v530_v9  ;;  %v704_v11 = vpop.f32.mrf.mxu3 }
  0xfe   : > { %v705_v13 = vadd.f32 %v2743_v57, %v704_v11  ;;  %v493_v14 = vpop.f32.mrf.mxu0 }
  0xff   : > { %v576_v15 = vpack.c.bf16 %v531_v10, %v531_v10  ;;  %v494_v16 = vadd.f32 %v2736_v52, %v493_v14  ;;  %v667_v17 = vpop.f32.mrf.mxu1 }
 0x100   : > { %v2075_v18 = vpack.c.bf16 %v705_v13, %v703_v12  ;;  %v668_v27 = vadd.f32 %v2743_v57, %v667_v17 }
 0x101   : > { %609 = vst.msk [vmem:[#allocation3 + $0x5c] sm:$0xf] %vm585_vm1, %v576_v15  ;;  %v561_v19 = vpack.c.bf16 %v494_v16, %v494_v16 }
 0x102   : > { %2107 = vst [vmem:[#allocation2 + $0x38] sm:$0xff] %v2075_v18  }
 0x103   : > { %594 = vst.msk [vmem:[#allocation3 + $0x20] sm:$0xf] %vm585_vm1, %v561_v19 }
 0x104   : > { %v533_v20 = vpop.f32.mrf.mxu2 }
 0x105   : > { %v534_v21 = vadd.f32 %v2736_v52, %v533_v20  ;;  %v707_v22 = vpop.f32.mrf.mxu3 }
 0x106   : > { %v495_v23 = vpop.f32.mrf.mxu0  ;;  %v708_v34 = vadd.f32 %v2743_v57, %v707_v22 }
 0x107   : > { %v577_v24 = vpack.c.bf16 %v534_v21, %v534_v21  ;;  %v496_v25 = vadd.f32 %v2736_v52, %v495_v23  ;;  %v669_v26 = vpop.f32.mrf.mxu1 }
 0x108   : > { %v670_v28 = vadd.f32 %v2743_v57, %v669_v26 }
 0x109   : > { %610 = vst.msk [vmem:[#allocation3 + $0x60] sm:$0xf] %vm585_vm1, %v577_v24  ;;  %v562_v29 = vpack.c.bf16 %v496_v25, %v496_v25 }
 0x10a   : > { %v2040_v30 = vpack.c.bf16 %v670_v28, %v668_v27 }
 0x10b   : > { %595 = vst.msk [vmem:[#allocation3 + $0x24] sm:$0xf] %vm585_vm1, %v562_v29 }
 0x10c   : > { %2100 = vst [vmem:[#allocation2 + $0x50] sm:$0xff] %v2040_v30   ;;  %v535_v31 = vpop.f32.mrf.mxu2 }
 0x10d   : > { %v536_v32 = vadd.f32 %v2736_v52, %v535_v31  ;;  %v709_v33 = vpop.f32.mrf.mxu3 }
 0x10e   : > { %v710_v35 = vadd.f32 %v2743_v57, %v709_v33  ;;  %v498_v36 = vpop.f32.mrf.mxu0 }
 0x10f   : > { %v578_v37 = vpack.c.bf16 %v536_v32, %v536_v32  ;;  %v499_v38 = vadd.f32 %v2736_v52, %v498_v36  ;;  %v672_v39 = vpop.f32.mrf.mxu1 }
 0x110   : > { %v2080_v40 = vpack.c.bf16 %v710_v35, %v708_v34  ;;  %v673_v49 = vadd.f32 %v2743_v57, %v672_v39 }
 0x111   : > { %611 = vst.msk [vmem:[#allocation3 + $0x64] sm:$0xf] %vm585_vm1, %v578_v37  ;;  %v563_v41 = vpack.c.bf16 %v499_v38, %v499_v38 }
 0x112   : > { %2108 = vst [vmem:[#allocation2 + $0x60] sm:$0xff] %v2080_v40  }
 0x113   : > { %596 = vst.msk [vmem:[#allocation3 + $0x28] sm:$0xf] %vm585_vm1, %v563_v41 }
 0x114   : > { %v538_v42 = vpop.f32.mrf.mxu2 }
 0x115   : > { %v539_v43 = vadd.f32 %v2736_v52, %v538_v42  ;;  %v712_v44 = vpop.f32.mrf.mxu3 }
 0x116   : > { %v500_v45 = vpop.f32.mrf.mxu0  ;;  %v713_v58 = vadd.f32 %v2743_v57, %v712_v44 }
 0x117   : > { %v579_v46 = vpack.c.bf16 %v539_v43, %v539_v43  ;;  %v501_v47 = vadd.f32 %v2736_v52, %v500_v45  ;;  %v674_v48 = vpop.f32.mrf.mxu1 }
 0x118   : > { %v675_v50 = vadd.f32 %v2743_v57, %v674_v48 }
 0x119   : > { %612 = vst.msk [vmem:[#allocation3 + $0x68] sm:$0xf] %vm585_vm1, %v579_v46  ;;  %v564_v51 = vpack.c.bf16 %v501_v47, %v501_v47 }
 0x11a   : > { %v2045_v53 = vpack.c.bf16 %v675_v50, %v673_v49 }
 0x11b   : > { %597 = vst.msk [vmem:[#allocation3 + $0x2c] sm:$0xf] %vm585_vm1, %v564_v51 }
 0x11c   : > { %2101 = vst [vmem:[#allocation2 + $0x68] sm:$0xff] %v2045_v53   ;;  %v540_v54 = vpop.f32.mrf.mxu2 }
 0x11d   : > { %v541_v55 = vadd.f32 %v2736_v52, %v540_v54  ;;  %v714_v56 = vpop.f32.mrf.mxu3 }
 0x11e   : > { %v715_v59 = vadd.f32 %v2743_v57, %v714_v56  ;;  %v503_v60 = vpop.f32.mrf.mxu0 }
 0x11f   : > { %v580_v61 = vpack.c.bf16 %v541_v55, %v541_v55  ;;  %v504_v62 = vadd.f32 %v2736_v52, %v503_v60  ;;  %v677_v63 = vpop.f32.mrf.mxu1 }
 0x120   : > { %v2085_v0 = vpack.c.bf16 %v715_v59, %v713_v58  ;;  %v678_v9 = vadd.f32 %v2743_v57, %v677_v63 }
 0x121   : > { %613 = vst.msk [vmem:[#allocation3 + $0x6c] sm:$0xf] %vm585_vm1, %v580_v61  ;;  %v565_v1 = vpack.c.bf16 %v504_v62, %v504_v62 }
 0x122   : > { %2109 = vst [vmem:[#allocation2 + $0x70] sm:$0xff] %v2085_v0  }
 0x123   : > { %598 = vst.msk [vmem:[#allocation3 + $0x30] sm:$0xf] %vm585_vm1, %v565_v1 }
 0x124   : > { %v543_v2 = vpop.f32.mrf.mxu2 }
 0x125   : > { %v544_v3 = vadd.f32 %v2736_v52, %v543_v2  ;;  %v717_v4 = vpop.f32.mrf.mxu3 }
 0x126   : > { %v505_v5 = vpop.f32.mrf.mxu0  ;;  %v718_v16 = vadd.f32 %v2743_v57, %v717_v4 }
 0x127   : > { %v581_v6 = vpack.c.bf16 %v544_v3, %v544_v3  ;;  %v506_v7 = vadd.f32 %v2736_v52, %v505_v5  ;;  %v679_v8 = vpop.f32.mrf.mxu1 }
 0x128   : > { %v680_v10 = vadd.f32 %v2743_v57, %v679_v8 }
 0x129   : > { %614 = vst.msk [vmem:[#allocation3 + $0x70] sm:$0xf] %vm585_vm1, %v581_v6  ;;  %v566_v11 = vpack.c.bf16 %v506_v7, %v506_v7 }
 0x12a   : > { %v2050_v12 = vpack.c.bf16 %v680_v10, %v678_v9 }
 0x12b   : > { %599 = vst.msk [vmem:[#allocation3 + $0x34] sm:$0xf] %vm585_vm1, %v566_v11 }
 0x12c   : > { %2102 = vst [vmem:[#allocation2 + $0x8] sm:$0xff] %v2050_v12   ;;  %v545_v13 = vpop.f32.mrf.mxu2 }
 0x12d   : > { %v546_v14 = vadd.f32 %v2736_v52, %v545_v13  ;;  %v719_v15 = vpop.f32.mrf.mxu3 }
 0x12e   : > { %v720_v17 = vadd.f32 %v2743_v57, %v719_v15  ;;  %v508_v18 = vpop.f32.mrf.mxu0 }
 0x12f   : > { %v582_v19 = vpack.c.bf16 %v546_v14, %v546_v14  ;;  %v509_v20 = vadd.f32 %v2736_v52, %v508_v18  ;;  %v682_v21 = vpop.f32.mrf.mxu1 }
 0x130   : > { %v2090_v22 = vpack.c.bf16 %v720_v17, %v718_v16  ;;  %v683_v31 = vadd.f32 %v2743_v57, %v682_v21 }
 0x131   : > { %615 = vst.msk [vmem:[#allocation3 + $0x74] sm:$0xf] %vm585_vm1, %v582_v19  ;;  %v567_v23 = vpack.c.bf16 %v509_v20, %v509_v20 }
 0x132   : > { %2110 = vst [vmem:[#allocation2 + $0x78] sm:$0xff] %v2090_v22  }
 0x133   : > { %600 = vst.msk [vmem:[#allocation3 + $0x38] sm:$0xf] %vm585_vm1, %v567_v23 }
 0x134   : > { %v548_v24 = vpop.f32.mrf.mxu2 }
 0x135   : > { %v549_v25 = vadd.f32 %v2736_v52, %v548_v24  ;;  %v722_v26 = vpop.f32.mrf.mxu3 }
 0x136   : > { %v510_v27 = vpop.f32.mrf.mxu0  ;;  %v723_v38 = vadd.f32 %v2743_v57, %v722_v26 }
 0x137   : > { %v583_v28 = vpack.c.bf16 %v549_v25, %v549_v25  ;;  %v511_v29 = vadd.f32 %v2736_v52, %v510_v27  ;;  %v684_v30 = vpop.f32.mrf.mxu1 }
 0x138   : > { %v685_v32 = vadd.f32 %v2743_v57, %v684_v30 }
 0x139   : > { %616 = vst.msk [vmem:[#allocation3 + $0x78] sm:$0xf] %vm585_vm1, %v583_v28  ;;  %v568_v33 = vpack.c.bf16 %v511_v29, %v511_v29 }
 0x13a   : > { %v2055_v34 = vpack.c.bf16 %v685_v32, %v683_v31 }
 0x13b   : > { %601 = vst.msk [vmem:[#allocation3 + $0x3c] sm:$0xf] %vm585_vm1, %v568_v33 }
 0x13c   : > { %2103 = vst [vmem:[#allocation2 + $0x48] sm:$0xff] %v2055_v34   ;;  %v550_v35 = vpop.f32.mrf.mxu2 }
 0x13d   : > { %v551_v36 = vadd.f32 %v2736_v52, %v550_v35  ;;  %v724_v37 = vpop.f32.mrf.mxu3 }
 0x13e   : > { %v725_v39 = vadd.f32 %v2743_v57, %v724_v37 }
 0x13f   : > { %v584_v40 = vpack.c.bf16 %v551_v36, %v551_v36 }
 0x140   : > { %v2095_v41 = vpack.c.bf16 %v725_v39, %v723_v38 }
 0x141   : > { %617 = vst.msk [vmem:[#allocation3 + $0x7c] sm:$0xf] %vm585_vm1, %v584_v40 }
 0x142   : > { %2111 = vst [vmem:[#allocation2 + $0x28] sm:$0xff] %v2095_v41  }
 0x143 PF: > { %v1984_v42 = vld [vmem:[%s3155_s3 + $0x8] sm:$0xff]  ;;  %s1827_s15 = sshll.u32 %s2466_s13, 7  ;;  %v1983_v52 = vld [vmem:[%s3155_s3] sm:$0xff]  ;;  %vm837_vm2 = vcmask 261120   ;;  %v1999_v55 = vld [vmem:[#allocation2 + $0x78] sm:$0xff]  ;;  %s1595_s18 = sld [smem:[#allocation4]] }
 0x144   : > { %s2844_s25 = scalar_lea.vmem %s2645_s23, %s1827_s15 [#allocation5]  ;;  %868 = vmatpush.bf16.msra.mxu0 %v1984_v42  ;;  %2116 = vmatpush.bf16.msra.mxu3 %v1984_v42  ;;  %v1992_v51 = vld [vmem:[#allocation2 + $0x48] sm:$0xff]  ;;  %v1998_v0 = vld [vmem:[#allocation2 + $0x70] sm:$0xff]  ;;  %v1997_v2 = vld [vmem:[#allocation2 + $0x60] sm:$0xff]  ;;  %s1973_s24 = sshll.u32 %s2466_s13, 4 }
 0x145   : > { %v2850_v57 = vld [vmem:[%s2844_s25] sm:$0xff]  ;;  %v2853_v43 = vld [vmem:[%s2844_s25 + $0x8] sm:$0xff]  ;;  %v2859_v45 = vld [vmem:[%s2844_s25 + $0x10] sm:$0xff]  ;;  %1047 = vmatpush.bf16.xpose.msra.mxu1 %v1992_v51  ;;  %s1974_s20 = sshll.u32 %s2470_s14, 5  ;;  %s3180_s28 = sld [smem:[#allocation18_spill]] }
 0x146   : > { %v809_v44 = vpack.c.bf16 %v2853_v43, %v2850_v57  ;;  %v2862_v46 = vld [vmem:[%s2844_s25 + $0x18] sm:$0xff]  ;;  %v2867_v48 = vld [vmem:[%s2844_s25 + $0x40] sm:$0xff]  ;;  %v802_v49 = vld [vmem:[%s2844_s25 + $0x48] sm:$0xff]  ;;  %s1673_s26 = sadd.s32 %s1974_s20, %s1973_s24  ;;  %s1676_s17 = sshll.u32 %s2654_s19, 4  ;;  %s1677_s17 = int_to_ptr.vmem [resolvable:$true] %s1676_s17 }
 0x147   : > { %v810_v47 = vpack.c.bf16 %v2862_v46, %v2859_v45  ;;  %v813_v50 = vpack.c.bf16 %v802_v49, %v2867_v48  ;;  %v1991_v54 = vld [vmem:[#allocation2 + $0x8] sm:$0xff]  ;;  %v2874_v56 = vld [vmem:[%s2844_s25 + $0x20] sm:$0xff]  ;;  %v803_v59 = vld [vmem:[%s2844_s25 + $0x50] sm:$0xff]  ;;  %s1975_s8 = sshll.u32 %s1673_s26, 3  ;;  %s1662_s23 = scalar_lea.sflag [#allocation7], %s338_s22 }
 0x148   : > { %869 = vmatpush.bf16.msra.mxu0 %v1983_v52  ;;  %2117 = vmatpush.bf16.msra.mxu3 %v1983_v52  ;;  %v2877_v58 = vld [vmem:[%s2844_s25 + $0x28] sm:$0xff]  ;;  %v804_v60 = vld [vmem:[%s2844_s25 + $0x58] sm:$0xff]  ;;  %v1989_v1 = vld [vmem:[#allocation2 + $0x50] sm:$0xff] }
 0x149   : > { %v2000_v53 = vld [vmem:[#allocation2 + $0x28] sm:$0xff]  ;;  %v811_v61 = vpack.c.bf16 %v2877_v58, %v2874_v56  ;;  %v814_v62 = vpack.c.bf16 %v804_v60, %v803_v59  ;;  %v2886_v3 = vld [vmem:[%s2844_s25 + $0x30] sm:$0xff]  ;;  %v2889_v4 = vld [vmem:[%s2844_s25 + $0x38] sm:$0xff] }
 0x14a   : > { %1096 = vmatpush.bf16.xpose.msra.mxu2 %v2000_v53  ;;  %v1990_v63 = vld [vmem:[#allocation2 + $0x68] sm:$0xff]  ;;  %v805_v5 = vld [vmem:[%s2844_s25 + $0x60] sm:$0xff]  ;;  %v812_v7 = vpack.c.bf16 %v2889_v4, %v2886_v3  ;;  %v1988_v9 = vld [vmem:[#allocation2 + $0x18] sm:$0xff] }
 0x14b   : > { %1836 = vmatmul.msk.bf16.vlgmr.msra.gmra.mxu0 %vm837_vm2, %v809_v44  ;;  %1840 = vmatmul.msk.bf16.vlgmr.msra.gmra.mxu3 %vm837_vm2, %v813_v50  ;;  %v806_v6 = vld [vmem:[%s2844_s25 + $0x68] sm:$0xff]  ;;  %v1996_v10 = vld [vmem:[#allocation2 + $0x38] sm:$0xff]  ;;  %v1995_v12 = vld [vmem:[#allocation2 + $0x10] sm:$0xff]  ;;  %s1675_s10 = scalar_lea.hbm %s3180_s28, %s1975_s8  ;;  %s2380_s26 = scalar_lea.hbm %s3180_s28, 512 }
 0x14c   : > { %v815_v8 = vpack.c.bf16 %v806_v6, %v805_v5  ;;  %v1987_v11 = vld [vmem:[#allocation2 + $0x58] sm:$0xff]  ;;  %v807_v13 = vld [vmem:[%s2844_s25 + $0x70] sm:$0xff]  ;;  %v1986_v16 = vld [vmem:[#allocation2] sm:$0xff]  ;;  %s1678_s27 = sshll.u32 %s1675_s10, 4  ;;  %s1679_s27 = int_to_ptr.hbm [resolvable:$true] %s1678_s27 }
 0x14d   : > { %1048 = vmatpush.bf16.xpose.msra.mxu1 %v1991_v54  ;;  %v808_v14 = vld [vmem:[%s2844_s25 + $0x78] sm:$0xff]  ;;  %v1994_v17 = vld [vmem:[#allocation2 + $0x20] sm:$0xff]  ;;  %v1985_v18 = vld [vmem:[#allocation2 + $0x30] sm:$0xff]  ;;  %s2374_s21 = sshra.s32 %s1679_s27, 4  ;;  %s2375_s21 = int_to_ptr.hbm [resolvable:$true] %s2374_s21 }
 0x14e   : > { %v816_v15 = vpack.c.bf16 %v808_v14, %v807_v13  ;;  %v1993_v19 = vld [vmem:[#allocation2 + $0x40] sm:$0xff]  ;;  %p2381_p11 = scmp.lt.s32.totalorder %s2375_s21, %s3180_s28 }
 0x14f   : > { %v2226_v21 = vld [vmem:[%s3156_s4] ss:$0 sm:$0xff] }
 0x152   : > { %1097 = vmatpush.bf16.xpose.msra.mxu2 %v1999_v55 }
 0x155   : > { %1049 = vmatpush.bf16.xpose.msra.mxu1 %v1990_v63 }
 0x15a   : > { %1098 = vmatpush.bf16.xpose.msra.mxu2 %v1998_v0 }
 0x15b   : > { %1837 = vmatmul.msk.bf16.gmra.mxu0 %vm837_vm2, %v810_v47  ;;  %1841 = vmatmul.msk.bf16.gmra.mxu3 %vm837_vm2, %v814_v62 }
 0x15d   : > { %1050 = vmatpush.bf16.xpose.msra.mxu1 %v1989_v1 }
 0x162   : > { %1099 = vmatpush.bf16.xpose.msra.mxu2 %v1997_v2 }
 0x165   : > { %1051 = vmatpush.bf16.xpose.msra.mxu1 %v1988_v9 }
 0x16a   : > { %1100 = vmatpush.bf16.xpose.msra.mxu2 %v1996_v10 }
 0x16b   : > { %1838 = vmatmul.msk.bf16.gmra.mxu0 %vm837_vm2, %v811_v61  ;;  %1842 = vmatmul.msk.bf16.gmra.mxu3 %vm837_vm2, %v815_v8 }
 0x16d   : > { %1052 = vmatpush.bf16.xpose.msra.mxu1 %v1987_v11 }
 0x172   : > { %1101 = vmatpush.bf16.xpose.msra.mxu2 %v1995_v12 }
 0x175   : > { %1053 = vmatpush.bf16.xpose.msra.mxu1 %v1986_v16 }
 0x17a   : > { %1102 = vmatpush.bf16.xpose.msra.mxu2 %v1994_v17 }
 0x17b   : > { %1839 = vmatmul.msk.bf16.gmra.mxu0 %vm837_vm2, %v812_v7  ;;  %1843 = vmatmul.msk.bf16.gmra.mxu3 %vm837_vm2, %v816_v15 }
 0x17d   : > { %1054 = vmatpush.bf16.xpose.msra.mxu1 %v1985_v18 }
 0x182   : > { %1103 = vmatpush.bf16.xpose.msra.mxu2 %v1993_v19 }
 0x1c8   : > { %v871_v20 = vpop.f32.mrf.mxu0 }
 0x1c9   : > { %v872_v23 = vadd.f32 %v2226_v21, %v871_v20 }
 0x1ce   : > { %v891_v36 = vpop.f32.mrf.mxu3 }
 0x1cf   : > { %v892_v44 = vadd.f32 %v2226_v21, %v891_v36 }
 0x1d0   : > { %v873_v22 = vpop.f32.mrf.mxu0 }
 0x1d1   : > { %v874_v24 = vadd.f32 %v2226_v21, %v873_v22 }
 0x1d3   : > { %v911_v25 = vpack.c.bf16 %v874_v24, %v872_v23 }
 0x1d5   : > { %1055 = vmatmul.bf16.vlgmr.msra.gmra.mxu1 %v911_v25  ;;  %1104 = vmatmul.bf16.vlgmr.msra.gmra.mxu2 %v911_v25  ;;  %v2008_v25 = vld [vmem:[#allocation3 + $0x38] sm:$0xff] }
 0x1d6   : > { %v893_v39 = vpop.f32.mrf.mxu3  ;;  %1497 = vmatpush.bf16.msrb.mxu3 %v2008_v25 }
 0x1d7   : > { %v894_v47 = vadd.f32 %v2226_v21, %v893_v39  ;;  %v2014_v39 = vld [vmem:[#allocation3 + $0x68] sm:$0xff] }
 0x1d8   : > { %v876_v26 = vpop.f32.mrf.mxu0 }
 0x1d9   : > { %v877_v28 = vadd.f32 %v2226_v21, %v876_v26  ;;  %v915_v49 = vpack.c.bf16 %v894_v47, %v892_v44  ;;  %v2013_v44 = vld [vmem:[#allocation3 + $0x60] sm:$0xff]  ;;  %v2004_v47 = vld [vmem:[#allocation3 + $0x18] sm:$0xff] }
 0x1de   : > { %v896_v52 = vpop.f32.mrf.mxu3 }
 0x1df   : > { %v897_v53 = vadd.f32 %v2226_v21, %v896_v52 }
 0x1e0   : > { %v878_v27 = vpop.f32.mrf.mxu0 }
 0x1e1   : > { %v879_v29 = vadd.f32 %v2226_v21, %v878_v27 }
 0x1e3   : > { %v912_v30 = vpack.c.bf16 %v879_v29, %v877_v28  ;;  %v2016_v29 = vld [vmem:[#allocation3 + $0x78] sm:$0xff] }
 0x1e4   : > { %1546 = vmatpush.bf16.msrb.mxu0 %v2016_v29 }
 0x1e5   : > { %1060 = vmatmul.bf16.gmra.mxu1 %v912_v30  ;;  %1109 = vmatmul.bf16.gmra.mxu2 %v912_v30  ;;  %v2007_v30 = vld [vmem:[#allocation3 + $0x30] sm:$0xff] }
 0x1e6   : > { %v898_v50 = vpop.f32.mrf.mxu3  ;;  %1498 = vmatpush.bf16.msrb.mxu3 %v2007_v30 }
 0x1e7   : > { %v899_v54 = vadd.f32 %v2226_v21, %v898_v50 }
 0x1e8   : > { %v881_v31 = vpop.f32.mrf.mxu0 }
 0x1e9   : > { %v882_v33 = vadd.f32 %v2226_v21, %v881_v31  ;;  %v916_v55 = vpack.c.bf16 %v899_v54, %v897_v53  ;;  %v2012_v53 = vld [vmem:[#allocation3 + $0x58] sm:$0xff]  ;;  %v2003_v54 = vld [vmem:[#allocation3 + $0x10] sm:$0xff] }
 0x1ee   : > { %v901_v51 = vpop.f32.mrf.mxu3 }
 0x1ef   : > { %v902_v60 = vadd.f32 %v2226_v21, %v901_v51 }
 0x1f0   : > { %v883_v32 = vpop.f32.mrf.mxu0 }
 0x1f1   : > { %v884_v34 = vadd.f32 %v2226_v21, %v883_v32 }
 0x1f3   : > { %v913_v35 = vpack.c.bf16 %v884_v34, %v882_v33  ;;  %v2015_v34 = vld [vmem:[#allocation3 + $0x70] sm:$0xff] }
 0x1f4   : > { %1547 = vmatpush.bf16.msrb.mxu0 %v2015_v34 }
 0x1f5   : > { %1065 = vmatmul.bf16.gmra.mxu1 %v913_v35  ;;  %1114 = vmatmul.bf16.gmra.mxu2 %v913_v35  ;;  %v2006_v35 = vld [vmem:[#allocation3 + $0x28] sm:$0xff] }
 0x1f6   : > { %v903_v59 = vpop.f32.mrf.mxu3  ;;  %1499 = vmatpush.bf16.msrb.mxu3 %v2006_v35 }
 0x1f7   : > { %v904_v61 = vadd.f32 %v2226_v21, %v903_v59 }
 0x1f8   : > { %v886_v37 = vpop.f32.mrf.mxu0  ;;  %1548 = vmatpush.bf16.msrb.mxu0 %v2014_v39 }
 0x1f9   : > { %v887_v40 = vadd.f32 %v2226_v21, %v886_v37  ;;  %v917_v63 = vpack.c.bf16 %v904_v61, %v902_v60  ;;  %v2011_v61 = vld [vmem:[#allocation3 + $0x50] sm:$0xff] }
 0x1fc   : > { %1549 = vmatpush.bf16.msrb.mxu0 %v2013_v44 }
 0x1fe   : > { %v906_v62 = vpop.f32.mrf.mxu3 }
 0x1ff   : > { %v907_v1 = vadd.f32 %v2226_v21, %v906_v62  ;;  %v2002_v62 = vld [vmem:[#allocation3 + $0x8] sm:$0xff] }
 0x200   : > { %v888_v38 = vpop.f32.mrf.mxu0  ;;  %1550 = vmatpush.bf16.msrb.mxu0 %v2012_v53 }
 0x201   : > { %v889_v41 = vadd.f32 %v2226_v21, %v888_v38 }
 0x203   : > { %v914_v42 = vpack.c.bf16 %v889_v41, %v887_v40  ;;  %v2005_v40 = vld [vmem:[#allocation3 + $0x20] sm:$0xff] }
 0x204   : > { %1500 = vmatpush.bf16.msrb.mxu3 %v2005_v40  ;;  %1551 = vmatpush.bf16.msrb.mxu0 %v2011_v61 }
 0x205   : > { %1070 = vmatmul.bf16.gmra.mxu1 %v914_v42  ;;  %1119 = vmatmul.bf16.gmra.mxu2 %v914_v42 }
 0x206   : > { %v908_v0 = vpop.f32.mrf.mxu3 }
 0x207   : > { %v909_v2 = vadd.f32 %v2226_v21, %v908_v0 }
 0x208   : > { %1501 = vmatpush.bf16.msrb.mxu3 %v2004_v47 }
 0x209   : > { %v918_v5 = vpack.c.bf16 %v909_v2, %v907_v1  ;;  %v2010_v2 = vld [vmem:[#allocation3 + $0x48] sm:$0xff] }
 0x20a   : > { %1552 = vmatpush.bf16.msrb.mxu0 %v2010_v2 }
 0x20c   : > { %1502 = vmatpush.bf16.msrb.mxu3 %v2003_v54 }
 0x210   : > { %1503 = vmatpush.bf16.msrb.mxu3 %v2002_v62 }
 0x215   : > { %1075 = vmatmul.bf16.gmra.mxu1 %v915_v49  ;;  %1124 = vmatmul.bf16.gmra.mxu2 %v915_v49 }
 0x225   : > { %1080 = vmatmul.bf16.gmra.mxu1 %v916_v55  ;;  %1129 = vmatmul.bf16.gmra.mxu2 %v916_v55 }
 0x235   : > { %1085 = vmatmul.bf16.gmra.mxu1 %v917_v63  ;;  %1134 = vmatmul.bf16.gmra.mxu2 %v917_v63 }
 0x245   : > { %1090 = vmatmul.bf16.gmra.mxu1 %v918_v5  ;;  %1139 = vmatmul.bf16.gmra.mxu2 %v918_v5  ;;  %v2001_v5 = vld [vmem:[#allocation3] sm:$0xff] }
 0x246   : > { %1504 = vmatpush.bf16.msrb.mxu3 %v2001_v5 }
 0x252   : > { %v2903_v6 = vpop.f32.mrf.mxu1 }
 0x258   : > { %v2905_v7 = vpop.f32.mrf.mxu2 }
 0x259   : > { %v1145_v8 = vmax.f32 %v2903_v6, %v2905_v7 }
 0x25a   : > { %v2909_v9 = vpop.f32.mrf.mxu1 }
 0x25b   : > { %1146 = vmax.xlane.f32.xlu0 %v1145_v8 }
 0x260   : > { %v2911_v10 = vpop.f32.mrf.mxu2 }
 0x261   : > { %v1148_v11 = vmax.f32 %v2909_v9, %v2911_v10 }
 0x262   : > { %v2915_v12 = vpop.f32.mrf.mxu1 }
 0x263   : > { %1149 = vmax.xlane.f32.xlu0 %v1148_v11  ;;  %v2009_v11 = vld [vmem:[#allocation3 + $0x40] sm:$0xff] }
 0x264   : > { %1553 = vmatpush.bf16.msrb.mxu0 %v2009_v11 }
 0x268   : > { %v2917_v13 = vpop.f32.mrf.mxu2 }
 0x269   : > { %v1151_v14 = vmax.f32 %v2915_v12, %v2917_v13 }
 0x26a   : > { %v2921_v15 = vpop.f32.mrf.mxu1 }
 0x26b   : > { %1152 = vmax.xlane.f32.xlu1 %v1151_v14 }
 0x270   : > { %v2923_v16 = vpop.f32.mrf.mxu2 }
 0x271   : > { %v1154_v17 = vmax.f32 %v2921_v15, %v2923_v16 }
 0x272   : > { %v2927_v18 = vpop.f32.mrf.mxu1 }
 0x273   : > { %1155 = vmax.xlane.f32.xlu1 %v1154_v17 }
 0x278   : > { %v2929_v19 = vpop.f32.mrf.mxu2 }
 0x279   : > { %v1157_v20 = vmax.f32 %v2927_v18, %v2929_v19 }
 0x27a   : > { %v2933_v21 = vpop.f32.mrf.mxu1 }
 0x27b   : > { %1158 = vmax.xlane.f32.xlu2 %v1157_v20 }
 0x280   : > { %v2935_v22 = vpop.f32.mrf.mxu2 }
 0x281   : > { %v1160_v23 = vmax.f32 %v2933_v21, %v2935_v22 }
 0x282   : > { %v2939_v24 = vpop.f32.mrf.mxu1 }
 0x283   : > { %1161 = vmax.xlane.f32.xlu2 %v1160_v23 }
 0x288   : > { %v2941_v26 = vpop.f32.mrf.mxu2 }
 0x289   : > { %v1163_v27 = vmax.f32 %v2939_v24, %v2941_v26 }
 0x28a   : > { %v2945_v28 = vpop.f32.mrf.mxu1 }
 0x28b   : > { %1164 = vmax.xlane.f32.xlu0 %v1163_v27 }
 0x290   : > { %v2947_v31 = vpop.f32.mrf.mxu2 }
 0x291   : > { %v1166_v32 = vmax.f32 %v2945_v28, %v2947_v31 }
 0x292   : > { %v2951_v33 = vpop.f32.mrf.mxu1 }
 0x293   : > { %1167 = vmax.xlane.f32.xlu1 %v1166_v32 }
 0x298   : > { %v2953_v36 = vpop.f32.mrf.mxu2 }
 0x299   : > { %v1169_v37 = vmax.f32 %v2951_v33, %v2953_v36 }
 0x29a   : > { %v2957_v38 = vpop.f32.mrf.mxu1 }
 0x29b   : > { %1170 = vmax.xlane.f32.xlu2 %v1169_v37 }
 0x2a0   : > { %v2959_v41 = vpop.f32.mrf.mxu2 }
 0x2a1   : > { %v1172_v42 = vmax.f32 %v2957_v38, %v2959_v41 }
 0x2a2   : > { %v2963_v52 = vpop.f32.mrf.mxu1 }
 0x2a3   : > { %1173 = vmax.xlane.f32.xlu0 %v1172_v42 }
 0x2a8   : > { %v2965_v49 = vpop.f32.mrf.mxu2 }
 0x2a9   : > { %v1175_v50 = vmax.f32 %v2963_v52, %v2965_v49 }
 0x2aa   : > { %v2969_v51 = vpop.f32.mrf.mxu1 }
 0x2ab   : > { %1176 = vmax.xlane.f32.xlu1 %v1175_v50 }
 0x2b0   : > { %v2971_v55 = vpop.f32.mrf.mxu2 }
 0x2b1   : > { %v1178_v59 = vmax.f32 %v2969_v51, %v2971_v55 }
 0x2b2   : > { %v2975_v60 = vpop.f32.mrf.mxu1 }
 0x2b3   : > { %1179 = vmax.xlane.f32.xlu2 %v1178_v59 }
 0x2b8   : > { %v2977_v63 = vpop.f32.mrf.mxu2 }
 0x2b9   : > { %v1181_v0 = vmax.f32 %v2975_v60, %v2977_v63 }
 0x2ba   : > { %v2981_v1 = vpop.f32.mrf.mxu1 }
 0x2bb   : > { %1182 = vmax.xlane.f32.xlu0 %v1181_v0 }
 0x2c0   : > { %v2983_v8 = vpop.f32.mrf.mxu2 }
 0x2c1   : > { %v1184_v14 = vmax.f32 %v2981_v1, %v2983_v8 }
 0x2c2   : > { %v2987_v17 = vpop.f32.mrf.mxu1 }
 0x2c3   : > { %1185 = vmax.xlane.f32.xlu1 %v1184_v14 }
 0x2c8   : > { %v2989_v20 = vpop.f32.mrf.mxu2 }
 0x2c9   : > { %v1187_v23 = vmax.f32 %v2987_v17, %v2989_v20 }
 0x2ca   : > { %v2995_v30 = vpop.f32.mrf.mxu1 }
 0x2cb   : > { %1188 = vmax.xlane.f32.xlu2 %v1187_v23 }
 0x2ce   : > { %v1147_v25 = vpop.xlane.xlu0 %1146 }
 0x2cf   : > { %v1193_v27 = vsub.f32 %v2903_v6, %v1147_v25  ;;  %v1194_v29 = vsub.f32 %v2905_v7, %v1147_v25 }
 0x2d0   : > { %v2997_v32 = vpop.f32.mrf.mxu2 }
 0x2d1   : > { %v1225_v34 = vmul.f32 1.442695, %v1193_v27  ;;  %v1227_v35 = vmul.f32 1.442695, %v1194_v29  ;;  %v1190_v37 = vmax.f32 %v2995_v30, %v2997_v32 }
 0x2d3   : > { %2227 = vpow2.f32 %v1225_v34  ;;  %1191 = vmax.xlane.f32.xlu0 %v1190_v37 }
 0x2d4   : > { %2229 = vpow2.f32 %v1227_v35 }
 0x2d6   : > { %v1150_v39 = vpop.xlane.xlu0 %1149 }
 0x2d7   : > { %v1195_v40 = vsub.f32 %v2909_v9, %v1150_v39  ;;  %v1196_v42 = vsub.f32 %v2911_v10, %v1150_v39 }
 0x2d9   : > { %v2228_v6 = vpop.eup %2227  ;;  %v1229_v44 = vmul.f32 1.442695, %v1195_v40  ;;  %v1231_v7 = vmul.f32 1.442695, %v1196_v42 }
 0x2da   : > { %v2230_v47 = vpop.eup %2229 }
 0x2db   : > { %2231 = vpow2.f32 %v1229_v44  ;;  %v1289_v50 = vadd.f32 %v2230_v47, %v2228_v6 }
 0x2dc   : > { %2233 = vpow2.f32 %v1231_v7 }
 0x2dd   : > { %1290 = vadd.xlane.f32.xlu1 %v1289_v50 }
 0x2de   : > { %v1153_v53 = vpop.xlane.xlu1 %1152 }
 0x2df   : > { %v1197_v54 = vsub.f32 %v2915_v12, %v1153_v53  ;;  %v1198_v59 = vsub.f32 %v2917_v13, %v1153_v53 }
 0x2e1   : > { %v2232_v61 = vpop.eup %2231  ;;  %v1233_v62 = vmul.f32 1.442695, %v1197_v54  ;;  %v1235_v0 = vmul.f32 1.442695, %v1198_v59 }
 0x2e2   : > { %v2234_v2 = vpop.eup %2233  ;;  %v1353_v9 = vpack.c.bf16 %v2232_v61, %v2228_v6 }
 0x2e3   : > { %2235 = vpow2.f32 %v1233_v62  ;;  %v1354_v10 = vpack.c.bf16 %v2234_v2, %v2230_v47  ;;  %v1292_v5 = vadd.f32 %v2234_v2, %v2232_v61 }
 0x2e4   : > { %2237 = vpow2.f32 %v1235_v0  ;;  %1505 = vmatmul.bf16.vlgmr.msrb.gmra.mxu3 %v1353_v9 }
 0x2e5   : > { %1554 = vmatmul.bf16.vlgmr.msrb.gmra.mxu0 %v1354_v10  ;;  %1293 = vadd.xlane.f32.xlu2 %v1292_v5 }
 0x2e6   : > { %v1156_v11 = vpop.xlane.xlu1 %1155 }
 0x2e7   : > { %v1199_v14 = vsub.f32 %v2921_v15, %v1156_v11  ;;  %v1200_v23 = vsub.f32 %v2923_v16, %v1156_v11 }
 0x2e9   : > { %v2236_v12 = vpop.eup %2235  ;;  %v1237_v25 = vmul.f32 1.442695, %v1199_v14  ;;  %v1239_v13 = vmul.f32 1.442695, %v1200_v23 }
 0x2ea   : > { %v2238_v27 = vpop.eup %2237 }
 0x2eb   : > { %2239 = vpow2.f32 %v1237_v25  ;;  %v1295_v29 = vadd.f32 %v2238_v27, %v2236_v12 }
 0x2ec   : > { %2241 = vpow2.f32 %v1239_v13 }
 0x2ed   : > { %1296 = vadd.xlane.f32.xlu0 %v1295_v29 }
 0x2ee   : > { %v1159_v34 = vpop.xlane.xlu2 %1158 }
 0x2ef   : > { %v1201_v35 = vsub.f32 %v2927_v18, %v1159_v34  ;;  %v1202_v37 = vsub.f32 %v2929_v19, %v1159_v34 }
 0x2f1   : > { %v2240_v39 = vpop.eup %2239  ;;  %v1241_v40 = vmul.f32 1.442695, %v1201_v35  ;;  %v1243_v42 = vmul.f32 1.442695, %v1202_v37 }
 0x2f2   : > { %v2242_v6 = vpop.eup %2241  ;;  %v1355_v15 = vpack.c.bf16 %v2240_v39, %v2236_v12 }
 0x2f3   : > { %2243 = vpow2.f32 %v1241_v40  ;;  %v1356_v16 = vpack.c.bf16 %v2242_v6, %v2238_v27  ;;  %v1298_v44 = vadd.f32 %v2242_v6, %v2240_v39 }
 0x2f4   : > { %2245 = vpow2.f32 %v1243_v42  ;;  %1510 = vmatmul.bf16.gmra.mxu3 %v1355_v15 }
 0x2f5   : > { %1559 = vmatmul.bf16.gmra.mxu0 %v1356_v16  ;;  %1299 = vadd.xlane.f32.xlu1 %v1298_v44 }
 0x2f6   : > { %v1162_v7 = vpop.xlane.xlu2 %1161 }
 0x2f7   : > { %v1203_v47 = vsub.f32 %v2933_v21, %v1162_v7  ;;  %v1204_v50 = vsub.f32 %v2935_v22, %v1162_v7 }
 0x2f9   : > { %v2244_v18 = vpop.eup %2243  ;;  %v1245_v53 = vmul.f32 1.442695, %v1203_v47  ;;  %v1247_v19 = vmul.f32 1.442695, %v1204_v50 }
 0x2fa   : > { %v2246_v54 = vpop.eup %2245 }
 0x2fb   : > { %2247 = vpow2.f32 %v1245_v53  ;;  %v1301_v59 = vadd.f32 %v2246_v54, %v2244_v18 }
 0x2fc   : > { %2249 = vpow2.f32 %v1247_v19 }
 0x2fd   : > { %1302 = vadd.xlane.f32.xlu2 %v1301_v59 }
 0x2fe   : > { %v1165_v61 = vpop.xlane.xlu0 %1164 }
 0x2ff   : > { %v1205_v62 = vsub.f32 %v2939_v24, %v1165_v61  ;;  %v1206_v0 = vsub.f32 %v2941_v26, %v1165_v61 }
 0x301   : > { %v2248_v2 = vpop.eup %2247  ;;  %v1249_v9 = vmul.f32 1.442695, %v1205_v62  ;;  %v1251_v10 = vmul.f32 1.442695, %v1206_v0 }
 0x302   : > { %v2250_v5 = vpop.eup %2249  ;;  %v1357_v21 = vpack.c.bf16 %v2248_v2, %v2244_v18 }
 0x303   : > { %2251 = vpow2.f32 %v1249_v9  ;;  %v1358_v22 = vpack.c.bf16 %v2250_v5, %v2246_v54  ;;  %v1304_v11 = vadd.f32 %v2250_v5, %v2248_v2 }
 0x304   : > { %2253 = vpow2.f32 %v1251_v10  ;;  %1515 = vmatmul.bf16.gmra.mxu3 %v1357_v21 }
 0x305   : > { %1564 = vmatmul.bf16.gmra.mxu0 %v1358_v22  ;;  %1305 = vadd.xlane.f32.xlu0 %v1304_v11 }
 0x306   : > { %v1168_v14 = vpop.xlane.xlu1 %1167 }
 0x307   : > { %v1207_v23 = vsub.f32 %v2945_v28, %v1168_v14  ;;  %v1208_v12 = vsub.f32 %v2947_v31, %v1168_v14 }
 0x309   : > { %v2252_v24 = vpop.eup %2251  ;;  %v1253_v25 = vmul.f32 1.442695, %v1207_v23  ;;  %v1255_v26 = vmul.f32 1.442695, %v1208_v12 }
 0x30a   : > { %v2254_v13 = vpop.eup %2253 }
 0x30b   : > { %2255 = vpow2.f32 %v1253_v25  ;;  %v1307_v27 = vadd.f32 %v2254_v13, %v2252_v24 }
 0x30c   : > { %2257 = vpow2.f32 %v1255_v26 }
 0x30d   : > { %1308 = vadd.xlane.f32.xlu1 %v1307_v27 }
 0x30e   : > { %v1171_v29 = vpop.xlane.xlu2 %1170 }
 0x30f   : > { %v1209_v34 = vsub.f32 %v2951_v33, %v1171_v29  ;;  %v1210_v35 = vsub.f32 %v2953_v36, %v1171_v29 }
 0x311   : > { %v2256_v37 = vpop.eup %2255  ;;  %v1257_v39 = vmul.f32 1.442695, %v1209_v34  ;;  %v1259_v40 = vmul.f32 1.442695, %v1210_v35 }
 0x312   : > { %v2258_v42 = vpop.eup %2257  ;;  %v1359_v28 = vpack.c.bf16 %v2256_v37, %v2252_v24 }
 0x313   : > { %2259 = vpow2.f32 %v1257_v39  ;;  %v1360_v31 = vpack.c.bf16 %v2258_v42, %v2254_v13  ;;  %v1310_v6 = vadd.f32 %v2258_v42, %v2256_v37 }
 0x314   : > { %2261 = vpow2.f32 %v1259_v40  ;;  %1520 = vmatmul.bf16.gmra.mxu3 %v1359_v28 }
 0x315   : > { %1569 = vmatmul.bf16.gmra.mxu0 %v1360_v31  ;;  %1311 = vadd.xlane.f32.xlu2 %v1310_v6 }
 0x316   : > { %v1174_v15 = vpop.xlane.xlu0 %1173 }
 0x317   : > { %v1211_v16 = vsub.f32 %v2957_v38, %v1174_v15  ;;  %v1212_v44 = vsub.f32 %v2959_v41, %v1174_v15 }
 0x319   : > { %v2260_v33 = vpop.eup %2259  ;;  %v1261_v7 = vmul.f32 1.442695, %v1211_v16  ;;  %v1263_v36 = vmul.f32 1.442695, %v1212_v44 }
 0x31a   : > { %v2262_v47 = vpop.eup %2261 }
 0x31b   : > { %2263 = vpow2.f32 %v1261_v7  ;;  %v1313_v50 = vadd.f32 %v2262_v47, %v2260_v33 }
 0x31c   : > { %2265 = vpow2.f32 %v1263_v36 }
 0x31d   : > { %1314 = vadd.xlane.f32.xlu0 %v1313_v50 }
 0x31e   : > { %v1177_v18 = vpop.xlane.xlu1 %1176 }
 0x31f   : > { %v1213_v53 = vsub.f32 %v2963_v52, %v1177_v18  ;;  %v1214_v19 = vsub.f32 %v2965_v49, %v1177_v18 }
 0x321   : > { %v2264_v54 = vpop.eup %2263  ;;  %v1265_v59 = vmul.f32 1.442695, %v1213_v53  ;;  %v1267_v61 = vmul.f32 1.442695, %v1214_v19 }
 0x322   : > { %v2266_v62 = vpop.eup %2265  ;;  %v1361_v38 = vpack.c.bf16 %v2264_v54, %v2260_v33 }
 0x323   : > { %2267 = vpow2.f32 %v1265_v59  ;;  %v1362_v41 = vpack.c.bf16 %v2266_v62, %v2262_v47  ;;  %v1316_v0 = vadd.f32 %v2266_v62, %v2264_v54 }
 0x324   : > { %2269 = vpow2.f32 %v1267_v61  ;;  %1525 = vmatmul.bf16.gmra.mxu3 %v1361_v38 }
 0x325   : > { %1574 = vmatmul.bf16.gmra.mxu0 %v1362_v41  ;;  %1317 = vadd.xlane.f32.xlu1 %v1316_v0 }
 0x326   : > { %v1180_v2 = vpop.xlane.xlu2 %1179 }
 0x327   : > { %v1215_v9 = vsub.f32 %v2969_v51, %v1180_v2  ;;  %v1216_v10 = vsub.f32 %v2971_v55, %v1180_v2  ;;  %v3031_v2 = vstv %s1595_s18  ;;  %s2376_s18 = scalar_lea.hbm %s2375_s21, 128 }
 0x328   : > { %p2377_p7 = scmp.ne.s32.totalorder %s2375_s21, %s2376_s18  ;;  %p2382_p13 = scmp.lt.s32.totalorder %s2380_s26, %s2376_s18 }
 0x329   : > { %v2268_v52 = vpop.eup %2267  ;;  %v1269_v5 = vmul.f32 1.442695, %v1215_v9  ;;  %v1271_v49 = vmul.f32 1.442695, %v1216_v10 }
 0x32a   : > { %v2270_v21 = vpop.eup %2269  ;;  %p2378_p9 = pnand %p2377_p7, %p2618_p12  ;;  %p2383_p0 = por %p2382_p13, %p2381_p11 }
 0x32b   : > { %2271 = vpow2.f32 %v1269_v5  ;;  %v1319_v22 = vadd.f32 %v2270_v21, %v2268_v52 }
 0x32c   : > { %2273 = vpow2.f32 %v1271_v49  ;;  %p2379_p10 = pneg %p2378_p9 }
 0x32d   : > { %1320 = vadd.xlane.f32.xlu2 %v1319_v22 }
 0x32e   : > { %v1183_v11 = vpop.xlane.xlu0 %1182  ;;  %p2384_p1 = pnand %p2383_p0, %p2379_p10 }
 0x32f   : > { %v1217_v14 = vsub.f32 %v2975_v60, %v1183_v11  ;;  %v1218_v23 = vsub.f32 %v2977_v63, %v1183_v11 }
 0x331   : > { %v2272_v12 = vpop.eup %2271  ;;  %v1273_v24 = vmul.f32 1.442695, %v1217_v14  ;;  %v1275_v25 = vmul.f32 1.442695, %v1218_v23 }
 0x332   : > { %v2274_v26 = vpop.eup %2273  ;;  %v1363_v51 = vpack.c.bf16 %v2272_v12, %v2268_v52 }
 0x333   : > { %2275 = vpow2.f32 %v1273_v24  ;;  %v1364_v55 = vpack.c.bf16 %v2274_v26, %v2270_v21  ;;  %v1322_v13 = vadd.f32 %v2274_v26, %v2272_v12 }
 0x334   : > { %2277 = vpow2.f32 %v1275_v25  ;;  %1530 = vmatmul.bf16.gmra.mxu3 %v1363_v51 }
 0x335   : > { %1579 = vmatmul.bf16.gmra.mxu0 %v1364_v55  ;;  %1323 = vadd.xlane.f32.xlu0 %v1322_v13 }
 0x336   : > { %v1186_v27 = vpop.xlane.xlu1 %1185 }
 0x337   : > { %v1219_v29 = vsub.f32 %v2981_v1, %v1186_v27  ;;  %v1220_v34 = vsub.f32 %v2983_v8, %v1186_v27 }
 0x339   : > { %v2276_v60 = vpop.eup %2275  ;;  %v1277_v35 = vmul.f32 1.442695, %v1219_v29  ;;  %v1279_v63 = vmul.f32 1.442695, %v1220_v34 }
 0x33a   : > { %v2278_v37 = vpop.eup %2277 }
 0x33b   : > { %2279 = vpow2.f32 %v1277_v35  ;;  %v1325_v39 = vadd.f32 %v2278_v37, %v2276_v60 }
 0x33c   : > { %2281 = vpow2.f32 %v1279_v63 }
 0x33d   : > { %1326 = vadd.xlane.f32.xlu1 %v1325_v39 }
 0x33e   : > { %v1189_v40 = vpop.xlane.xlu2 %1188 }
 0x33f   : > { %v1221_v42 = vsub.f32 %v2987_v17, %v1189_v40  ;;  %v1222_v28 = vsub.f32 %v2989_v20, %v1189_v40 }
 0x341   : > { %v2280_v31 = vpop.eup %2279  ;;  %v1281_v6 = vmul.f32 1.442695, %v1221_v42  ;;  %v1283_v15 = vmul.f32 1.442695, %v1222_v28 }
 0x342   : > { %v2282_v16 = vpop.eup %2281  ;;  %v1365_v1 = vpack.c.bf16 %v2280_v31, %v2276_v60 }
 0x343   : > { %2283 = vpow2.f32 %v1281_v6  ;;  %v1366_v8 = vpack.c.bf16 %v2282_v16, %v2278_v37  ;;  %v1328_v44 = vadd.f32 %v2282_v16, %v2280_v31 }
 0x344   : > { %2285 = vpow2.f32 %v1283_v15  ;;  %1535 = vmatmul.bf16.gmra.mxu3 %v1365_v1 }
 0x345   : > { %1584 = vmatmul.bf16.gmra.mxu0 %v1366_v8  ;;  %1329 = vadd.xlane.f32.xlu2 %v1328_v44 }
 0x346   : > { %v1192_v33 = vpop.xlane.xlu0 %1191 }
 0x347   : > { %v1223_v7 = vsub.f32 %v2995_v30, %v1192_v33  ;;  %v1224_v36 = vsub.f32 %v2997_v32, %v1192_v33 }
 0x349   : > { %v2284_v17 = vpop.eup %2283  ;;  %v1285_v47 = vmul.f32 1.442695, %v1223_v7  ;;  %v1287_v20 = vmul.f32 1.442695, %v1224_v36 }
 0x34a   : > { %v2286_v50 = vpop.eup %2285 }
 0x34b   : > { %2287 = vpow2.f32 %v1285_v47  ;;  %v1331_v18 = vadd.f32 %v2286_v50, %v2284_v17 }
 0x34c   : > { %2289 = vpow2.f32 %v1287_v20 }
 0x34d   : > { %1332 = vadd.xlane.f32.xlu0 %v1331_v18 }
 0x350   : > { %v1291_v62 = vpop.xlane.xlu1 %1290 }
 0x351   : > { %v2288_v53 = vpop.eup %2287  ;;  %2291 = vrcp.f32 %v1291_v62 }
 0x352   : > { %v2290_v19 = vpop.eup %2289  ;;  %v1367_v54 = vpack.c.bf16 %v2288_v53, %v2284_v17 }
 0x353   : > { %v1368_v59 = vpack.c.bf16 %v2290_v19, %v2286_v50  ;;  %v1334_v61 = vadd.f32 %v2290_v19, %v2288_v53 }
 0x354   : > { %1540 = vmatmul.bf16.gmra.mxu3 %v1367_v54 }
 0x355   : > { %1589 = vmatmul.bf16.gmra.mxu0 %v1368_v59  ;;  %1335 = vadd.xlane.f32.xlu1 %v1334_v61 }
 0x357   : > { %v2292_v0 = vpop.eup %2291 }
 0x358   : > { %v1294_v38 = vpop.xlane.xlu2 %1293 }
 0x359   : > { %2293 = vrcp.f32 %v1294_v38 }
 0x35f   : > { %v2294_v11 = vpop.eup %2293 }
 0x360   : > { %v1297_v21 = vpop.xlane.xlu0 %1296 }
 0x361   : > { %2295 = vrcp.f32 %v1297_v21 }
 0x362   : > { %v1555_v30 = vpop.f32.mrf.mxu0 }
 0x367   : > { %v1506_v32 = vpop.f32.mrf.mxu3 }
 0x368   : > { %v1556_v41 = vadd.f32 %v1555_v30, %v1506_v32  ;;  %v1300_v26 = vpop.xlane.xlu1 %1299 }
 0x369   : > { %2297 = vrcp.f32 %v1300_v26  ;;  %v2323_v26 = vld [vmem:[%s2844_s25 + $0x48] sm:$0xff] }
 0x36a   : > { %v1596_v9 = vmul.f32 %v2292_v0, %v1556_v41  ;;  %v1557_v10 = vpop.f32.mrf.mxu0 }
 0x36c   : > { %v1613_v52 = vmul.f32 %v3031_v2, %v1596_v9 }
 0x36e   : > { %v1629_v5 = vadd.f32 %v1613_v52, %v2850_v57  ;;  %v2296_v57 = vpop.eup %2295 }
 0x36f   : > { %v1508_v49 = vpop.f32.mrf.mxu3 }
 0x370   : > { %1645 = vst.msk [vmem:[%s2654_s19] sm:$0xff] %vm837_vm2, %v1629_v5  ;;  %v1558_v22 = vadd.f32 %v1557_v10, %v1508_v49  ;;  %v1303_v60 = vpop.xlane.xlu2 %1302 }
 0x371   : > { %2299 = vrcp.f32 %v1303_v60  ;;  %v2324_v60 = vld [vmem:[%s2844_s25 + $0x50] sm:$0xff] }
 0x372   : > { %v1597_v14 = vmul.f32 %v2294_v11, %v1558_v22  ;;  %v1560_v23 = vpop.f32.mrf.mxu0 }
 0x374   : > { %v1614_v12 = vmul.f32 %v3031_v2, %v1597_v14 }
 0x376   : > { %v1630_v24 = vadd.f32 %v1614_v12, %v2853_v43  ;;  %v2298_v43 = vpop.eup %2297 }
 0x377   : > { %v1511_v25 = vpop.f32.mrf.mxu3 }
 0x378   : > { %1646 = vst.msk [vmem:[%s2654_s19 + $0x8] sm:$0xff] %vm837_vm2, %v1630_v24  ;;  %v1561_v51 = vadd.f32 %v1560_v23, %v1511_v25  ;;  %v1306_v28 = vpop.xlane.xlu0 %1305 }
 0x379   : > { %2301 = vrcp.f32 %v1306_v28 }
 0x37a   : > { %v1598_v55 = vmul.f32 %v2296_v57, %v1561_v51  ;;  %v1562_v13 = vpop.f32.mrf.mxu0 }
 0x37c   : > { %v1615_v27 = vmul.f32 %v3031_v2, %v1598_v55 }
 0x37e   : > { %v1631_v29 = vadd.f32 %v1615_v27, %v2859_v45  ;;  %v2300_v45 = vpop.eup %2299 }
 0x37f   : > { %v1513_v34 = vpop.f32.mrf.mxu3 }
 0x380   : > { %1647 = vst.msk [vmem:[%s2654_s19 + $0x10] sm:$0xff] %vm837_vm2, %v1631_v29  ;;  %v1563_v35 = vadd.f32 %v1562_v13, %v1513_v34  ;;  %v1309_v44 = vpop.xlane.xlu1 %1308 }
 0x381   : > { %2303 = vrcp.f32 %v1309_v44 }
 0x382   : > { %v1599_v63 = vmul.f32 %v2298_v43, %v1563_v35  ;;  %v1565_v37 = vpop.f32.mrf.mxu0 }
 0x384   : > { %v1616_v39 = vmul.f32 %v3031_v2, %v1599_v63 }
 0x386   : > { %v1632_v40 = vadd.f32 %v1616_v39, %v2862_v46  ;;  %v2302_v46 = vpop.eup %2301 }
 0x387   : > { %v1516_v42 = vpop.f32.mrf.mxu3 }
 0x388   : > { %1648 = vst.msk [vmem:[%s2654_s19 + $0x18] sm:$0xff] %vm837_vm2, %v1632_v40  ;;  %v1566_v31 = vadd.f32 %v1565_v37, %v1516_v42  ;;  %v1312_v50 = vpop.xlane.xlu2 %1311 }
 0x389   : > { %2305 = vrcp.f32 %v1312_v50 }
 0x38a   : > { %v1600_v6 = vmul.f32 %v2300_v45, %v1566_v31  ;;  %v1567_v15 = vpop.f32.mrf.mxu0  ;;  %v2325_v31 = vld [vmem:[%s2844_s25 + $0x58] sm:$0xff] }
 0x38c   : > { %v1617_v16 = vmul.f32 %v3031_v2, %v1600_v6 }
 0x38e   : > { %v1633_v1 = vadd.f32 %v1617_v16, %v2874_v56  ;;  %v2304_v56 = vpop.eup %2303 }
 0x38f   : > { %v1518_v8 = vpop.f32.mrf.mxu3 }
 0x390   : > { %1649 = vst.msk [vmem:[%s2654_s19 + $0x20] sm:$0xff] %vm837_vm2, %v1633_v1  ;;  %v1568_v33 = vadd.f32 %v1567_v15, %v1518_v8  ;;  %v1315_v62 = vpop.xlane.xlu0 %1314 }
 0x391   : > { %2307 = vrcp.f32 %v1315_v62 }
 0x392   : > { %v1601_v7 = vmul.f32 %v2302_v46, %v1568_v33  ;;  %v1570_v36 = vpop.f32.mrf.mxu0  ;;  %v2326_v46 = vld [vmem:[%s2844_s25 + $0x60] sm:$0xff] }
 0x394   : > { %v1618_v17 = vmul.f32 %v3031_v2, %v1601_v7 }
 0x396   : > { %v1634_v47 = vadd.f32 %v1618_v17, %v2877_v58  ;;  %v2306_v58 = vpop.eup %2305 }
 0x397   : > { %v1521_v20 = vpop.f32.mrf.mxu3 }
 0x398   : > { %1650 = vst.msk [vmem:[%s2654_s19 + $0x28] sm:$0xff] %vm837_vm2, %v1634_v47  ;;  %v1571_v18 = vadd.f32 %v1570_v36, %v1521_v20  ;;  %v1318_v10 = vpop.xlane.xlu1 %1317 }
 0x399   : > { %2309 = vrcp.f32 %v1318_v10 }
 0x39a   : > { %v1602_v53 = vmul.f32 %v2304_v56, %v1571_v18  ;;  %v1572_v19 = vpop.f32.mrf.mxu0 }
 0x39c   : > { %v1619_v54 = vmul.f32 %v3031_v2, %v1602_v53  ;;  %v2327_v53 = vld [vmem:[%s2844_s25 + $0x68] sm:$0xff] }
 0x39e   : > { %v1635_v59 = vadd.f32 %v1619_v54, %v2886_v3  ;;  %v2308_v3 = vpop.eup %2307 }
 0x39f   : > { %v1523_v61 = vpop.f32.mrf.mxu3  ;;  %v2310_v23 = vpop.eup %2309 }
 0x3a0   : > { %1651 = vst.msk [vmem:[%s2654_s19 + $0x30] sm:$0xff] %vm837_vm2, %v1635_v59  ;;  %v1573_v30 = vadd.f32 %v1572_v19, %v1523_v61  ;;  %v1321_v14 = vpop.xlane.xlu2 %1320 }
 0x3a1   : > { %2311 = vrcp.f32 %v1321_v14 }
 0x3a2   : > { %v1603_v32 = vmul.f32 %v2306_v58, %v1573_v30  ;;  %v1575_v38 = vpop.f32.mrf.mxu0 }
 0x3a4   : > { %v1620_v41 = vmul.f32 %v3031_v2, %v1603_v32  ;;  %v2328_v32 = vld [vmem:[%s2844_s25 + $0x70] sm:$0xff] }
 0x3a6   : > { %v1636_v0 = vadd.f32 %v1620_v41, %v2889_v4 }
 0x3a7   : > { %v1526_v9 = vpop.f32.mrf.mxu3  ;;  %v2312_v13 = vpop.eup %2311 }
 0x3a8   : > { %1652 = vst.msk [vmem:[%s2654_s19 + $0x38] sm:$0xff] %vm837_vm2, %v1636_v0  ;;  %v1576_v52 = vadd.f32 %v1575_v38, %v1526_v9  ;;  %v1324_v55 = vpop.xlane.xlu0 %1323 }
 0x3a9   : > { %2313 = vrcp.f32 %v1324_v55 }
 0x3aa   : > { %v1604_v5 = vmul.f32 %v2308_v3, %v1576_v52  ;;  %v1577_v49 = vpop.f32.mrf.mxu0 }
 0x3ac   : > { %v1621_v21 = vmul.f32 %v3031_v2, %v1604_v5  ;;  %v2329_v5 = vld [vmem:[%s2844_s25 + $0x78] sm:$0xff] }
 0x3ae   : > { %v1637_v22 = vadd.f32 %v1621_v21, %v2867_v48 }
 0x3af   : > { %v1528_v11 = vpop.f32.mrf.mxu3  ;;  %v2314_v39 = vpop.eup %2313 }
 0x3b0   : > { %1653 = vst.msk [vmem:[%s2654_s19 + $0x40] sm:$0xff] %vm837_vm2, %v1637_v22  ;;  %v1578_v4 = vadd.f32 %v1577_v49, %v1528_v11  ;;  %v1327_v63 = vpop.xlane.xlu1 %1326 }
 0x3b1   : > { %2315 = vrcp.f32 %v1327_v63 }
 0x3b2   : > { %v1605_v12 = vmul.f32 %v2310_v23, %v1578_v4  ;;  %v1580_v24 = vpop.f32.mrf.mxu0 }
 0x3b4   : > { %v1622_v25 = vmul.f32 %v3031_v2, %v1605_v12 }
 0x3b6   : > { %v1638_v51 = vadd.f32 %v2323_v26, %v1622_v25 }
 0x3b7   : > { %v1531_v57 = vpop.f32.mrf.mxu3  ;;  %v2316_v1 = vpop.eup %2315 }
 0x3b8   : > { %1654 = vst.msk [vmem:[%s2654_s19 + $0x48] sm:$0xff] %vm837_vm2, %v1638_v51  ;;  %v1581_v48 = vadd.f32 %v1580_v24, %v1531_v57  ;;  %v1330_v15 = vpop.xlane.xlu2 %1329 }
 0x3b9   : > { %2317 = vrcp.f32 %v1330_v15 }
 0x3ba   : > { %v1606_v27 = vmul.f32 %v2312_v13, %v1581_v48  ;;  %v1582_v29 = vpop.f32.mrf.mxu0 }
 0x3bc   : > { %v1623_v34 = vmul.f32 %v3031_v2, %v1606_v27 }
 0x3be   : > { %v1639_v35 = vadd.f32 %v2324_v60, %v1623_v34 }
 0x3bf   : > { %v1533_v43 = vpop.f32.mrf.mxu3  ;;  %v2318_v20 = vpop.eup %2317 }
 0x3c0   : > { %1655 = vst.msk [vmem:[%s2654_s19 + $0x50] sm:$0xff] %vm837_vm2, %v1639_v35  ;;  %v1583_v37 = vadd.f32 %v1582_v29, %v1533_v43  ;;  %v1333_v17 = vpop.xlane.xlu0 %1332 }
 0x3c1   : > { %2319 = vrcp.f32 %v1333_v17 }
 0x3c2   : > { %v1607_v40 = vmul.f32 %v2314_v39, %v1583_v37  ;;  %v1585_v42 = vpop.f32.mrf.mxu0 }
 0x3c4   : > { %v1624_v28 = vmul.f32 %v3031_v2, %v1607_v40 }
 0x3c6   : > { %v1640_v45 = vadd.f32 %v2325_v31, %v1624_v28 }
 0x3c7   : > { %v1536_v6 = vpop.f32.mrf.mxu3  ;;  %v2320_v62 = vpop.eup %2319 }
 0x3c8   : > { %1656 = vst.msk [vmem:[%s2654_s19 + $0x58] sm:$0xff] %vm837_vm2, %v1640_v45  ;;  %v1586_v16 = vadd.f32 %v1585_v42, %v1536_v6  ;;  %v1336_v59 = vpop.xlane.xlu1 %1335 }
 0x3c9   : > { %2321 = vrcp.f32 %v1336_v59 }
 0x3ca   : > { %v1608_v8 = vmul.f32 %v2316_v1, %v1586_v16  ;;  %v1587_v44 = vpop.f32.mrf.mxu0 }
 0x3cc   : > { %v1625_v33 = vmul.f32 %v3031_v2, %v1608_v8 }
 0x3ce   : > { %v1641_v7 = vadd.f32 %v2326_v46, %v1625_v33 }
 0x3cf   : > { %v1538_v36 = vpop.f32.mrf.mxu3  ;;  %v2322_v10 = vpop.eup %2321 }
 0x3d0   : > { %1657 = vst.msk [vmem:[%s2654_s19 + $0x60] sm:$0xff] %vm837_vm2, %v1641_v7  ;;  %v1588_v47 = vadd.f32 %v1587_v44, %v1538_v36 }
 0x3d2   : > { %v1609_v50 = vmul.f32 %v2318_v20, %v1588_v47  ;;  %v1590_v56 = vpop.f32.mrf.mxu0 }
 0x3d4   : > { %v1626_v18 = vmul.f32 %v3031_v2, %v1609_v50 }
 0x3d6   : > { %v1642_v19 = vadd.f32 %v2327_v53, %v1626_v18 }
 0x3d7   : > { %v1541_v54 = vpop.f32.mrf.mxu3 }
 0x3d8   : > { %1658 = vst.msk [vmem:[%s2654_s19 + $0x68] sm:$0xff] %vm837_vm2, %v1642_v19  ;;  %v1591_v61 = vadd.f32 %v1590_v56, %v1541_v54 }
 0x3da   : > { %v1610_v30 = vmul.f32 %v2320_v62, %v1591_v61  ;;  %v1592_v41 = vpop.f32.mrf.mxu0 }
 0x3dc   : > { %v1627_v58 = vmul.f32 %v3031_v2, %v1610_v30 }
 0x3de   : > { %v1643_v38 = vadd.f32 %v2328_v32, %v1627_v58 }
 0x3df   : > { %v1543_v0 = vpop.f32.mrf.mxu3 }
 0x3e0   : > { %1659 = vst.msk [vmem:[%s2654_s19 + $0x70] sm:$0xff] %vm837_vm2, %v1643_v38  ;;  %v1593_v9 = vadd.f32 %v1592_v41, %v1543_v0 }
 0x3e2   : > { %v1611_v52 = vmul.f32 %v2322_v10, %v1593_v9 }
 0x3e4   : > { %v1628_v3 = vmul.f32 %v3031_v2, %v1611_v52 }
 0x3e6   : > { %v1644_v49 = vadd.f32 %v2329_v5, %v1628_v3 }
 0x3e8   : > { %1660 = vst.msk [vmem:[%s2654_s19 + $0x78] sm:$0xff] %vm837_vm2, %v1644_v49 }
 0x3e9   : > { %2387 = shalt.err (!%p2384_p1)
}
 0x3ea   : > { %s2486_s22 = smov 128   ;;  %s2487_s19 = smov 8  }
 0x3eb   : > { %2120 = dma.vmem_to_hbm [thread:$0]  (%p2618_p12), %s1677_s17, 2048, %s1679_s27, %s1662_s23, %s2486_s22, %s2486_s22, %s2487_s19  }
 0x3ec PF: > { %p2131_p4 = scmp.ge.s32.totalorder %s2482_s16, 2  ;;  %s1693_s25 = sand.u32 1, %s2442_s29  }
 0x3ed   : > { %s1694_s14 = scalar_lea.sflag [#allocation7], %s1693_s25 }
 0x3ee   : > { %p2127_p5 = pnand %p2131_p4, %p2631_p2 }
 0x3f0   : > { %p2128_p6 = pneg %p2127_p5 }
 0x3f2   : > { %2437 = dma.done.wait (%p2128_p6), %s1694_s14, 2048  }
 0x3f3   : > { %2439 = vsyncadd (%p2128_p6), %s1694_s14, 4294965248  ;;  %s25_s16 = sadd.s32 1, %s2482_s16   ;;  %s3182_s10 = sld [smem:[#allocation17_spill]] }
 0x3f4   : > { %p22_p8 = scmp.ge.s32.totalorder %s25_s16, 6   ;;  %s3183_s15 = sld [smem:[#allocation16_spill]] }
 0x3f5   : > { %s3184_s13 = sld [smem:[#allocation11_spill]]  ;;  %s3188_s29 = smov %s2446_s30 }
 0x3f6   : > { %s3185_s14 = sld [smem:[#allocation12_spill]]  ;;  %s3189_s30 = smov %s2450_s9 }
 0x3f7   : > { %s3186_s7 = sld [smem:[#allocation13_spill]] }
 0x3f8   : > { %s3187_s17 = sld [smem:[#allocation14_spill]] }
 0x3f9   : > { %s3190_s9 = smov %s3182_s10  ;;  %s3191_s10 = smov %s2458_s11 }
 0x3fa   : > { %s3192_s11 = smov %s2462_s12  ;;  %s3193_s12 = smov %s3183_s15 }
 0x3fb   :  { %24 = sbr.rel (!%p22_p8) target bundleno = 12 (0xc), region = 102 }
 0x3fe   : > { %s3194_s15 = smov %s3187_s17 }
 0x400   :  { %1700 = vsyncpa [#allocation6], 1 }
 0x401   :  { %1702 = vsyncpa [#allocation6 + $0x1], 1 }
 0x402   :  { %1703 = vsyncpa [#allocation7], 1 }
 0x403   :  { %1705 = vsyncpa [#allocation7 + $0x1], 1 }

</bundles_post_ra>
